<compile_context>
chip_gen: v7x
topology: tpu7x:2x2x1
jax: 0.10.0
libtpu: 0.0.40
codegen_flags: <defaults>
</compile_context>

<pallas_src>
import math

import jax
import jax.numpy as jnp
from jax.experimental import pallas as pl
from jax.experimental.pallas import tpu as pltpu

# Plain Python floats only: they lower as jaxpr literals and can never trigger
# the "kernel captures constants" error.
LN_EPS = 1e-5
_INV_SQRT2 = 0.7071067811865476      # 1/sqrt(2)
_GELU_TANH_C = 0.7978845608028654    # sqrt(2/pi)


def _cdiv(a, b):
    return (a + b - 1) // b


def _round_up(x, m):
    return _cdiv(x, m) * m


def _make_mlp_kernel(num_hidden, row_tile, approx_gelu=False):
    """Fused MLP kernel for one (branch, row-tile) grid step.

    Ref order (num_hidden > 0): nrows, x, W_hidden, vec_hidden, W_out, b_out, out
      nrows      : (nb,) int32 SMEM (scalar prefetch) - valid rows per branch
      x          : (tm, H)            bf16 or f32
      W_hidden   : (num_hidden, H, H) bf16 or f32
      vec_hidden : (num_hidden, 3, H) f32, rows = [bias, ln_gamma, ln_beta]
      W_out      : (H, out_pad)       bf16 or f32
      b_out      : (1, out_pad)       f32
      out        : (tm, out_pad)      f32
    """

    def _gelu(h):
        if approx_gelu:
            # tanh approximation -> lands on the EUP slot (VALU relief on
            # v6e/v7x once matmuls are bf16).
            return 0.5 * h * (1.0 + jnp.tanh(_GELU_TANH_C *
                                             (h + 0.044715 * h * h * h)))
        # Exact erf GELU, matching nn.GELU() default.
        return 0.5 * h * (1.0 + jax.lax.erf(h * _INV_SQRT2))

    def _mm(a, w):
        if w.dtype == jnp.bfloat16:
            a = a.astype(jnp.bfloat16)
        return jnp.dot(a, w, preferred_element_type=jnp.float32)

    def _hidden_stack(x, wh_ref, vh_ref):
        h = x
        for layer in range(num_hidden):            # static unroll over layers
            vec = vh_ref[layer]                    # (3, H) f32
            h = _mm(h, wh_ref[layer]) + vec[0:1, :]
            # LayerNorm, single-pass statistics (biased variance like
            # nn.LayerNorm), f32 always.
            mu = jnp.mean(h, axis=-1, keepdims=True)
            msq = jnp.mean(h * h, axis=-1, keepdims=True)
            var = jnp.maximum(msq - mu * mu, 0.0)
            h = (h - mu) * jax.lax.rsqrt(var + LN_EPS)
            h = h * vec[1:2, :] + vec[2:3, :]
            h = _gelu(h)
        return h

    if num_hidden > 0:

        def kernel(nrows_ref, x_ref, wh_ref, vh_ref, wo_ref, bo_ref, out_ref):
            br = pl.program_id(0)
            row0 = pl.program_id(1) * row_tile

            @pl.when(row0 < nrows_ref[br])          # skip all-padding tiles
            def _():
                h = _hidden_stack(x_ref[...], wh_ref, vh_ref)
                y = _mm(h, wo_ref[...]) + bo_ref[...]
                out_ref[...] = y.astype(out_ref.dtype)

    else:

        def kernel(nrows_ref, x_ref, wo_ref, bo_ref, out_ref):
            br = pl.program_id(0)
            row0 = pl.program_id(1) * row_tile

            @pl.when(row0 < nrows_ref[br])
            def _():
                y = _mm(x_ref[...], wo_ref[...]) + bo_ref[...]
                out_ref[...] = y.astype(out_ref.dtype)

    return kernel


def _stack_branch_params(param_list, out_pad):
    """Stack per-branch params into branch-major arrays; pad output columns."""
    num_hidden = len(param_list[0]["hidden"])
    wh = vh = None
    if num_hidden > 0:
        wh = jnp.stack([
            jnp.stack([w for (w, _, _, _) in p["hidden"]]) for p in param_list
        ])  # [nb, L-1, H, H]
        vh = jnp.stack([
            jnp.stack([jnp.concatenate([b, g, be], axis=0)
                       for (_, b, g, be) in p["hidden"]])
            for p in param_list
        ])  # [nb, L-1, 3, H]
    w_out = jnp.stack([p["out"][0] for p in param_list])  # [nb, H, 3H]
    b_out = jnp.stack([p["out"][1] for p in param_list])  # [nb, 1, 3H]
    out_dim = w_out.shape[-1]
    pad = out_pad - out_dim
    if pad:
        w_out = jnp.pad(w_out, ((0, 0), (0, 0), (0, pad)))
        b_out = jnp.pad(b_out, ((0, 0), (0, 0), (0, pad)))
    return wh, vh, w_out, b_out


def _vmem_plan(n_max, hdim, out_pad, num_hidden, use_bf16, row_tile):
    """Pick the row tile against the device VMEM budget; return (tile, limit)."""
    w_bytes = 2 if use_bf16 else 4
    x_bytes = w_bytes                         # x is pre-cast with the weights

    def est(tile):
        weights = (num_hidden * hdim * hdim * w_bytes
                   + num_hidden * 3 * hdim * 4
                   + hdim * out_pad * w_bytes
                   + out_pad * 4)
        io = 2 * tile * hdim * x_bytes + 2 * tile * out_pad * 4
        temps = 4 * tile * max(hdim, out_pad) * 4   # live f32 intermediates
        # x2 on weights: conservative, covers the double-buffered fallback.
        return 2 * weights + io + temps

    try:
        cap = pltpu.get_tpu_info().vmem_capacity_bytes
    except Exception:
        cap = 64 << 20        # conservative: v7x per-TensorCore physical VMEM
    budget = cap * 3 // 4

    # Large row tile for DMA efficiency, clamped so small problems still get
    # >= 2 row steps and the first block dim stays a multiple of 8.
    tile = min(row_tile, max(8, _round_up(_cdiv(n_max, 2), 8)))
    while tile > 8 and est(tile) > budget:
        tile = max(8, ((tile // 2) // 8) * 8)

    vmem_limit = int(min(budget, max(32 << 20, est(tile) + (4 << 20))))
    return tile, vmem_limit


def _fused_mlp_pallas(nrows, x_stacked, wh, vh, w_out, b_out, num_hidden, *,
                      tile, out_dtype, vmem_limit_bytes, single_buffer_weights,
                      approx_gelu=False):
    """x_stacked: [nb, N_pad, H]; returns [nb, N_pad, out_pad] (out_dtype)."""
    nb, n_pad, hdim = x_stacked.shape
    out_pad = w_out.shape[-1]
    assert n_pad % tile == 0 and tile % 8 == 0
    assert out_pad % 128 == 0

    kernel = _make_mlp_kernel(num_hidden, tile, approx_gelu)

    def w_spec(shape, index_map):
        # Weights are constant along the inner row axis: single-buffer them to
        # halve their VMEM footprint (double-buffering never overlaps anything
        # here).
        if single_buffer_weights:
            return pl.BlockSpec(shape, index_map, pipeline_mode=pl.Buffered(1))
        return pl.BlockSpec(shape, index_map)

    in_specs = [pl.BlockSpec((None, tile, hdim), lambda br, i, nr: (br, i, 0))]
    args = [x_stacked]
    if num_hidden > 0:
        in_specs += [
            w_spec((None, num_hidden, hdim, hdim),
                   lambda br, i, nr: (br, 0, 0, 0)),
            w_spec((None, num_hidden, 3, hdim),
                   lambda br, i, nr: (br, 0, 0, 0)),
        ]
        args += [wh, vh]
    in_specs += [
        w_spec((None, hdim, out_pad), lambda br, i, nr: (br, 0, 0)),
        w_spec((None, 1, out_pad), lambda br, i, nr: (br, 0, 0)),
    ]
    args += [w_out, b_out]

    out_spec = pl.BlockSpec((None, tile, out_pad), lambda br, i, nr: (br, i, 0))

    return pl.pallas_call(
        kernel,
        out_shape=jax.ShapeDtypeStruct((nb, n_pad, out_pad), out_dtype),
        grid_spec=pltpu.PrefetchScalarGridSpec(
            num_scalar_prefetch=1,
            grid=(nb, n_pad // tile),
            in_specs=in_specs,
            out_specs=out_spec,
        ),
        # Every (branch, row-tile) step writes a distinct output block.
        # TODO(synk): on v7x, mark the branch axis pltpu.CORE_PARALLEL so each
        # TensorCore holds only one branch's weight set.
        compiler_params=pltpu.CompilerParams(
            dimension_semantics=("parallel", "parallel"),
            vmem_limit_bytes=vmem_limit_bytes,
        ),
    )(nrows, *args)


def mlp_head_forward(video_features, sentence_features, video_params,
                     sentence_params=None, *, video_only=False, row_tile=512,
                     use_bf16_matmul=True, approx_gelu=False):
    """Matches MLPHead.forward semantics (no dropout: build_mlps ignores it).

    video_features / sentence_features: [B, S, H] float32.
    Returns (video_out[B,S,3H], sentence_out[B,S,3H]) or just video_out.
    """
    _, _, hdim = video_features.shape
    feats = [video_features]
    params = [video_params]
    if not video_only:
        feats.append(sentence_features)
        params.append(sentence_params)

    # Flatten each branch to [rows, H]; pad both to a common padded row count.
    flat = [f.reshape(-1, hdim) for f in feats]
    n_rows = [f.shape[0] for f in flat]
    n_max = max(n_rows)

    num_hidden = len(video_params["hidden"])
    out_dim = video_params["out"][0].shape[1]
    out_pad = _round_up(out_dim, 128)          # lane-dense output slab

    tile, vmem_limit = _vmem_plan(n_max, hdim, out_pad, num_hidden,
                                  use_bf16_matmul, row_tile)
    n_pad = _round_up(n_max, tile)

    x_stacked = jnp.stack(
        [jnp.pad(f, ((0, n_pad - f.shape[0]), (0, 0))) for f in flat])
    nrows = jnp.asarray(n_rows, dtype=jnp.int32)     # scalar-prefetch operand

    wh, vh, w_out, b_out = _stack_branch_params(params, out_pad)

    if use_bf16_matmul:
        # Pre-cast MXU operands once in the wrapper (not per grid step):
        # halves their DMA bytes and VMEM residency. LN/GELU stay f32.
        if wh is not None:
            wh = wh.astype(jnp.bfloat16)
        w_out = w_out.astype(jnp.bfloat16)
        x_stacked = x_stacked.astype(jnp.bfloat16)

    call_kwargs = dict(tile=tile, out_dtype=jnp.float32,
                       vmem_limit_bytes=vmem_limit, approx_gelu=approx_gelu)
    try:
        y = _fused_mlp_pallas(nrows, x_stacked, wh, vh, w_out, b_out,
                              num_hidden, single_buffer_weights=True,
                              **call_kwargs)
    except Exception:
        # pipeline_mode=pl.Buffered(1) unsupported on this jax version /
        # backend: fall back to the default double-buffered weight pipeline.
        y = _fused_mlp_pallas(nrows, x_stacked, wh, vh, w_out, b_out,
                              num_hidden, single_buffer_weights=False,
                              **call_kwargs)

    outs = []
    for bi, (f, n) in enumerate(zip(feats, n_rows)):
        bb, ss, _ = f.shape
        outs.append(y[bi, :n, :out_dim].reshape(bb, ss, out_dim))
    if video_only:
        return outs[0]
    return outs[0], outs[1]


def init_mlp_params(key, hidden_dim, num_mlp_layers):
    """Deterministic synthetic init (shapes match build_mlps)."""
    hidden = []
    scale = 1.0 / math.sqrt(hidden_dim)
    for _ in range(num_mlp_layers - 1):
        key, k1, k2 = jax.random.split(key, 3)
        w = jax.random.uniform(k1, (hidden_dim, hidden_dim), jnp.float32,
                               -scale, scale)
        b = jax.random.uniform(k2, (1, hidden_dim), jnp.float32, -scale, scale)
        gamma = jnp.ones((1, hidden_dim), jnp.float32)   # LayerNorm weight
        beta = jnp.zeros((1, hidden_dim), jnp.float32)   # LayerNorm bias
        hidden.append((w, b, gamma, beta))
    key, k1, k2 = jax.random.split(key, 3)
    w_out = jax.random.uniform(k1, (hidden_dim, 3 * hidden_dim), jnp.float32,
                               -scale, scale)
    b_out = jax.random.uniform(k2, (1, 3 * hidden_dim), jnp.float32,
                               -scale, scale)
    return {"hidden": hidden, "out": (w_out, b_out)}, key


def _reference_branch(x, params):
    """Plain-JAX reference (f32, two-pass LN, exact GELU) for checking."""
    h = x.astype(jnp.float32)
    for (w, b, gamma, beta) in params["hidden"]:
        h = h @ w + b
        mu = jnp.mean(h, axis=-1, keepdims=True)
        var = jnp.mean((h - mu) ** 2, axis=-1, keepdims=True)
        h = (h - mu) / jnp.sqrt(var + LN_EPS)
        h = h * gamma + beta
        h = 0.5 * h * (1.0 + jax.lax.erf(h / jnp.sqrt(2.0)))
    w_out, b_out = params["out"]
    return h @ w_out + b_out


if __name__ == "__main__":
    hidden_dim = 32
    num_mlp_layers = 2
    batch, video_seq, sent_seq = 2, 8, 4   # unequal lengths exercise tile skip

    key = jax.random.PRNGKey(0)
    video_params, key = init_mlp_params(key, hidden_dim, num_mlp_layers)
    sentence_params, key = init_mlp_params(key, hidden_dim, num_mlp_layers)

    key, kv, ks = jax.random.split(key, 3)
    video_features = jax.random.normal(kv, (batch, video_seq, hidden_dim),
                                       jnp.float32)
    sentence_features = jax.random.normal(ks, (batch, sent_seq, hidden_dim),
                                          jnp.float32)

    v_ref = _reference_branch(video_features.reshape(-1, hidden_dim),
                              video_params).reshape(batch, video_seq,
                                                    3 * hidden_dim)
    s_ref = _reference_branch(sentence_features.reshape(-1, hidden_dim),
                              sentence_params).reshape(batch, sent_seq,
                                                       3 * hidden_dim)

    # 1) Strict f32 path (matches PyTorch numerics).
    v32, s32 = mlp_head_forward(video_features, sentence_features,
                                video_params, sentence_params,
                                use_bf16_matmul=False)
    jax.block_until_ready((v32, s32))
    assert v32.shape == (batch, video_seq, 3 * hidden_dim)
    assert s32.shape == (batch, sent_seq, 3 * hidden_dim)
    assert jnp.max(jnp.abs(v32 - v_ref)) < 5e-4
    assert jnp.max(jnp.abs(s32 - s_ref)) < 5e-4

    # 2) Default fast path (bf16 MXU operands, f32 accumulation / LN / GELU).
    v_out, s_out = mlp_head_forward(video_features, sentence_features,
                                    video_params, sentence_params)
    jax.block_until_ready((v_out, s_out))
    assert jnp.max(jnp.abs(v_out - v_ref)) < 5e-2
    assert jnp.max(jnp.abs(s_out - s_ref)) < 5e-2

    # 3) video_only path.
    v_only = mlp_head_forward(video_features, sentence_features, video_params,
                              sentence_params, video_only=True)
    jax.block_until_ready(v_only)
    assert v_only.shape == (batch, video_seq, 3 * hidden_dim)
    assert jnp.max(jnp.abs(v_only - v_ref)) < 5e-2

    print("KERNEL_OK")
</pallas_src>

<mosaic_0001>
module attributes {stable_mosaic.version = 11 : i64} {
  func.func @kernel(%arg0: i32, %arg1: i32, %arg2: memref<2xi32, #tpu.memory_space<smem>>, %arg3: memref<1x8x32xf32, #tpu.memory_space<vmem>>, %arg4: memref<1x1x32x32xf32, #tpu.memory_space<vmem>>, %arg5: memref<1x1x3x32xf32, #tpu.memory_space<vmem>>, %arg6: memref<1x32x128xf32, #tpu.memory_space<vmem>>, %arg7: memref<1x1x128xf32, #tpu.memory_space<vmem>>, %arg8: memref<1x8x128xf32, #tpu.memory_space<vmem>>) attributes {dimension_semantics = [#tpu.dimension_semantics<parallel>, #tpu.dimension_semantics<parallel>], iteration_bounds = array<i64: 2, 2>, scalar_prefetch = 1 : i64, scratch_operands = 0 : i64, tpu.core_type = #tpu.core_type<tc>, window_params = [{transform_indices = @transform_0, window_bounds = array<i64: 1, 8, 32>}, {pipeline_mode = #tpu.pipeline_mode<synchronous>, transform_indices = @transform_1, window_bounds = array<i64: 1, 1, 32, 32>}, {pipeline_mode = #tpu.pipeline_mode<synchronous>, transform_indices = @transform_2, window_bounds = array<i64: 1, 1, 3, 32>}, {pipeline_mode = #tpu.pipeline_mode<synchronous>, transform_indices = @transform_3, window_bounds = array<i64: 1, 32, 128>}, {pipeline_mode = #tpu.pipeline_mode<synchronous>, transform_indices = @transform_4, window_bounds = array<i64: 1, 1, 128>}, {transform_indices = @transform_5, window_bounds = array<i64: 1, 8, 128>}]} {
    %c8_i32 = arith.constant 8 : i32
    %0 = arith.muli %arg1, %c8_i32 : i32
    %1 = arith.index_cast %arg0 : i32 to index
    %2 = memref.load %arg2[%1] : memref<2xi32, #tpu.memory_space<smem>>
    %3 = arith.cmpi slt, %0, %2 : i32
    %4 = arith.extui %3 : i1 to i32
    %c0_i32 = arith.constant 0 : i32
    %5 = arith.cmpi ne, %4, %c0_i32 : i32
    scf.if %5 {
      %c0 = arith.constant 0 : index
      %c0_0 = arith.constant 0 : index
      %c0_1 = arith.constant 0 : index
      %6 = vector.load %arg3[%c0, %c0_0, %c0_1] : memref<1x8x32xf32, #tpu.memory_space<vmem>>, vector<1x8x32xf32>
      %7 = vector.shape_cast %6 : vector<1x8x32xf32> to vector<8x32xf32>
      %c0_2 = arith.constant 0 : index
      %c0_3 = arith.constant 0 : index
      %c0_4 = arith.constant 0 : index
      %c0_5 = arith.constant 0 : index
      %8 = vector.load %arg5[%c0_2, %c0_3, %c0_4, %c0_5] : memref<1x1x3x32xf32, #tpu.memory_space<vmem>>, vector<1x1x3x32xf32>
      %9 = vector.shape_cast %8 : vector<1x1x3x32xf32> to vector<3x32xf32>
      %c0_6 = arith.constant 0 : index
      %c0_7 = arith.constant 0 : index
      %c0_8 = arith.constant 0 : index
      %c0_9 = arith.constant 0 : index
      %10 = vector.load %arg4[%c0_6, %c0_7, %c0_8, %c0_9] : memref<1x1x32x32xf32, #tpu.memory_space<vmem>>, vector<1x1x32x32xf32>
      %11 = vector.shape_cast %10 : vector<1x1x32x32xf32> to vector<32x32xf32>
      %cst = arith.constant dense<0.000000e+00> : vector<8x32xf32>
      %12 = tpu.matmul %7, %11, %cst {dimension_numbers = #tpu.dot_dimension_numbers<[1], [0], [0], [1], [0, 0, 1, 1], [], []>} : vector<8x32xf32>, vector<32x32xf32>, vector<8x32xf32> -> vector<8x32xf32>
      %13 = vector.extract_strided_slice %9 {offsets = [0, 0], sizes = [1, 32], strides = [1, 1]} : vector<3x32xf32> to vector<1x32xf32>
      %14 = vector.broadcast %13 : vector<1x32xf32> to vector<8x32xf32>
      %15 = arith.addf %12, %14 : vector<8x32xf32>
      %cst_10 = arith.constant dense<0.000000e+00> : vector<8xf32>
      %16 = vector.multi_reduction <add>, %15, %cst_10 [1] : vector<8x32xf32> to vector<8xf32>
      %17 = vector.shape_cast %16 : vector<8xf32> to vector<8x1xf32>
      %cst_11 = arith.constant 3.200000e+01 : f32
      %18 = vector.broadcast %cst_11 : f32 to vector<8x1xf32>
      %19 = arith.divf %17, %18 : vector<8x1xf32>
      %20 = arith.mulf %15, %15 : vector<8x32xf32>
      %cst_12 = arith.constant dense<0.000000e+00> : vector<8xf32>
      %21 = vector.multi_reduction <add>, %20, %cst_12 [1] : vector<8x32xf32> to vector<8xf32>
      %22 = vector.shape_cast %21 : vector<8xf32> to vector<8x1xf32>
      %cst_13 = arith.constant 3.200000e+01 : f32
      %23 = vector.broadcast %cst_13 : f32 to vector<8x1xf32>
      %24 = arith.divf %22, %23 : vector<8x1xf32>
      %25 = arith.mulf %19, %19 : vector<8x1xf32>
      %26 = arith.subf %24, %25 : vector<8x1xf32>
      %cst_14 = arith.constant 0.000000e+00 : f32
      %27 = vector.broadcast %cst_14 : f32 to vector<8x1xf32>
      %28 = arith.maximumf %26, %27 : vector<8x1xf32>
      %29 = vector.broadcast %19 : vector<8x1xf32> to vector<8x32xf32>
      %30 = arith.subf %15, %29 : vector<8x32xf32>
      %cst_15 = arith.constant 9.99999974E-6 : f32
      %31 = vector.broadcast %cst_15 : f32 to vector<8x1xf32>
      %32 = arith.addf %28, %31 : vector<8x1xf32>
      %33 = math.rsqrt %32 : vector<8x1xf32>
      %34 = vector.broadcast %33 : vector<8x1xf32> to vector<8x32xf32>
      %35 = arith.mulf %30, %34 : vector<8x32xf32>
      %36 = vector.extract_strided_slice %9 {offsets = [1, 0], sizes = [1, 32], strides = [1, 1]} : vector<3x32xf32> to vector<1x32xf32>
      %37 = vector.broadcast %36 : vector<1x32xf32> to vector<8x32xf32>
      %38 = arith.mulf %35, %37 : vector<8x32xf32>
      %39 = vector.extract_strided_slice %9 {offsets = [2, 0], sizes = [1, 32], strides = [1, 1]} : vector<3x32xf32> to vector<1x32xf32>
      %40 = vector.broadcast %39 : vector<1x32xf32> to vector<8x32xf32>
      %41 = arith.addf %38, %40 : vector<8x32xf32>
      %cst_16 = arith.constant 5.000000e-01 : f32
      %42 = vector.broadcast %cst_16 : f32 to vector<8x32xf32>
      %43 = arith.mulf %42, %41 : vector<8x32xf32>
      %cst_17 = arith.constant 0.707106769 : f32
      %44 = vector.broadcast %cst_17 : f32 to vector<8x32xf32>
      %45 = arith.mulf %41, %44 : vector<8x32xf32>
      %46 = math.erf %45 : vector<8x32xf32>
      %cst_18 = arith.constant 1.000000e+00 : f32
      %47 = vector.broadcast %cst_18 : f32 to vector<8x32xf32>
      %48 = arith.addf %47, %46 : vector<8x32xf32>
      %49 = arith.mulf %43, %48 : vector<8x32xf32>
      %c0_19 = arith.constant 0 : index
      %c0_20 = arith.constant 0 : index
      %c0_21 = arith.constant 0 : index
      %50 = vector.load %arg6[%c0_19, %c0_20, %c0_21] : memref<1x32x128xf32, #tpu.memory_space<vmem>>, vector<1x32x128xf32>
      %51 = vector.shape_cast %50 : vector<1x32x128xf32> to vector<32x128xf32>
      %cst_22 = arith.constant dense<0.000000e+00> : vector<8x128xf32>
      %52 = tpu.matmul %49, %51, %cst_22 {dimension_numbers = #tpu.dot_dimension_numbers<[1], [0], [0], [1], [0, 0, 1, 1], [], []>} : vector<8x32xf32>, vector<32x128xf32>, vector<8x128xf32> -> vector<8x128xf32>
      %c0_23 = arith.constant 0 : index
      %c0_24 = arith.constant 0 : index
      %c0_25 = arith.constant 0 : index
      %53 = vector.load %arg7[%c0_23, %c0_24, %c0_25] : memref<1x1x128xf32, #tpu.memory_space<vmem>>, vector<1x1x128xf32>
      %54 = vector.shape_cast %53 : vector<1x1x128xf32> to vector<1x128xf32>
      %55 = vector.broadcast %54 : vector<1x128xf32> to vector<8x128xf32>
      %56 = arith.addf %52, %55 : vector<8x128xf32>
      %c0_26 = arith.constant 0 : index
      %c0_27 = arith.constant 0 : index
      %c0_28 = arith.constant 0 : index
      %57 = vector.load %arg8[%c0_26, %c0_27, %c0_28] : memref<1x8x128xf32, #tpu.memory_space<vmem>>, vector<1x8x128xf32>
      %58 = vector.shape_cast %57 : vector<1x8x128xf32> to vector<8x128xf32>
      %59 = vector.shape_cast %56 : vector<8x128xf32> to vector<1x8x128xf32>
      tpu.vector_store %arg8[%c0_26, %c0_27, %c0_28], %59 {strides = array<i32>} : memref<1x8x128xf32, #tpu.memory_space<vmem>>, vector<1x8x128xf32>,
    } else {
    }
    return
  }
  func.func @transform_0(%arg0: i32, %arg1: i32, %arg2: memref<2xi32, #tpu.memory_space<smem>>) -> (i32, i32, i32) {
    %c0_i32 = arith.constant 0 : i32
    %c0_i32_0 = arith.constant 0 : i32
    return %arg0, %arg1, %c0_i32 : i32, i32, i32
  }
  func.func @transform_1(%arg0: i32, %arg1: i32, %arg2: memref<2xi32, #tpu.memory_space<smem>>) -> (i32, i32, i32, i32) {
    %c0_i32 = arith.constant 0 : i32
    %c0_i32_0 = arith.constant 0 : i32
    %c0_i32_1 = arith.constant 0 : i32
    %c0_i32_2 = arith.constant 0 : i32
    return %arg0, %c0_i32, %c0_i32_0, %c0_i32_1 : i32, i32, i32, i32
  }
  func.func @transform_2(%arg0: i32, %arg1: i32, %arg2: memref<2xi32, #tpu.memory_space<smem>>) -> (i32, i32, i32, i32) {
    %c0_i32 = arith.constant 0 : i32
    %c0_i32_0 = arith.constant 0 : i32
    %c0_i32_1 = arith.constant 0 : i32
    %c0_i32_2 = arith.constant 0 : i32
    return %arg0, %c0_i32, %c0_i32_0, %c0_i32_1 : i32, i32, i32, i32
  }
  func.func @transform_3(%arg0: i32, %arg1: i32, %arg2: memref<2xi32, #tpu.memory_space<smem>>) -> (i32, i32, i32) {
    %c0_i32 = arith.constant 0 : i32
    %c0_i32_0 = arith.constant 0 : i32
    %c0_i32_1 = arith.constant 0 : i32
    return %arg0, %c0_i32, %c0_i32_0 : i32, i32, i32
  }
  func.func @transform_4(%arg0: i32, %arg1: i32, %arg2: memref<2xi32, #tpu.memory_space<smem>>) -> (i32, i32, i32) {
    %c0_i32 = arith.constant 0 : i32
    %c0_i32_0 = arith.constant 0 : i32
    %c0_i32_1 = arith.constant 0 : i32
    return %arg0, %c0_i32, %c0_i32_0 : i32, i32, i32
  }
  func.func @transform_5(%arg0: i32, %arg1: i32, %arg2: memref<2xi32, #tpu.memory_space<smem>>) -> (i32, i32, i32) {
    %c0_i32 = arith.constant 0 : i32
    %c0_i32_0 = arith.constant 0 : i32
    return %arg0, %arg1, %c0_i32 : i32, i32, i32
  }
}

module attributes {stable_mosaic.version = 11 : i64} {
  func.func @kernel(%arg0: i32, %arg1: i32, %arg2: memref<2xi32, #tpu.memory_space<smem>>, %arg3: memref<1x8x32xf32, #tpu.memory_space<vmem>>, %arg4: memref<1x1x32x32xf32, #tpu.memory_space<vmem>>, %arg5: memref<1x1x3x32xf32, #tpu.memory_space<vmem>>, %arg6: memref<1x32x128xf32, #tpu.memory_space<vmem>>, %arg7: memref<1x1x128xf32, #tpu.memory_space<vmem>>, %arg8: memref<1x8x128xf32, #tpu.memory_space<vmem>>) attributes {dimension_semantics = [#tpu.dimension_semantics<parallel>, #tpu.dimension_semantics<parallel>], iteration_bounds = array<i64: 2, 2>, scalar_prefetch = 1 : i64, scratch_operands = 0 : i64, tpu.core_type = #tpu.core_type<tc>, window_params = [{transform_indices = @transform_0, window_bounds = array<i64: 1, 8, 32>}, {transform_indices = @transform_1, window_bounds = array<i64: 1, 1, 32, 32>}, {transform_indices = @transform_2, window_bounds = array<i64: 1, 1, 3, 32>}, {transform_indices = @transform_3, window_bounds = array<i64: 1, 32, 128>}, {transform_indices = @transform_4, window_bounds = array<i64: 1, 1, 128>}, {transform_indices = @transform_5, window_bounds = array<i64: 1, 8, 128>}]} {
    %c8_i32 = arith.constant 8 : i32
    %0 = arith.muli %arg1, %c8_i32 : i32
    %1 = arith.index_cast %arg0 : i32 to index
    %2 = memref.load %arg2[%1] : memref<2xi32, #tpu.memory_space<smem>>
    %3 = arith.cmpi slt, %0, %2 : i32
    %4 = arith.extui %3 : i1 to i32
    %c0_i32 = arith.constant 0 : i32
    %5 = arith.cmpi ne, %4, %c0_i32 : i32
    scf.if %5 {
      %c0 = arith.constant 0 : index
      %c0_0 = arith.constant 0 : index
      %c0_1 = arith.constant 0 : index
      %6 = vector.load %arg3[%c0, %c0_0, %c0_1] : memref<1x8x32xf32, #tpu.memory_space<vmem>>, vector<1x8x32xf32>
      %7 = vector.shape_cast %6 : vector<1x8x32xf32> to vector<8x32xf32>
      %c0_2 = arith.constant 0 : index
      %c0_3 = arith.constant 0 : index
      %c0_4 = arith.constant 0 : index
      %c0_5 = arith.constant 0 : index
      %8 = vector.load %arg5[%c0_2, %c0_3, %c0_4, %c0_5] : memref<1x1x3x32xf32, #tpu.memory_space<vmem>>, vector<1x1x3x32xf32>
      %9 = vector.shape_cast %8 : vector<1x1x3x32xf32> to vector<3x32xf32>
      %c0_6 = arith.constant 0 : index
      %c0_7 = arith.constant 0 : index
      %c0_8 = arith.constant 0 : index
      %c0_9 = arith.constant 0 : index
      %10 = vector.load %arg4[%c0_6, %c0_7, %c0_8, %c0_9] : memref<1x1x32x32xf32, #tpu.memory_space<vmem>>, vector<1x1x32x32xf32>
      %11 = vector.shape_cast %10 : vector<1x1x32x32xf32> to vector<32x32xf32>
      %cst = arith.constant dense<0.000000e+00> : vector<8x32xf32>
      %12 = tpu.matmul %7, %11, %cst {dimension_numbers = #tpu.dot_dimension_numbers<[1], [0], [0], [1], [0, 0, 1, 1], [], []>} : vector<8x32xf32>, vector<32x32xf32>, vector<8x32xf32> -> vector<8x32xf32>
      %13 = vector.extract_strided_slice %9 {offsets = [0, 0], sizes = [1, 32], strides = [1, 1]} : vector<3x32xf32> to vector<1x32xf32>
      %14 = vector.broadcast %13 : vector<1x32xf32> to vector<8x32xf32>
      %15 = arith.addf %12, %14 : vector<8x32xf32>
      %cst_10 = arith.constant dense<0.000000e+00> : vector<8xf32>
      %16 = vector.multi_reduction <add>, %15, %cst_10 [1] : vector<8x32xf32> to vector<8xf32>
      %17 = vector.shape_cast %16 : vector<8xf32> to vector<8x1xf32>
      %cst_11 = arith.constant 3.200000e+01 : f32
      %18 = vector.broadcast %cst_11 : f32 to vector<8x1xf32>
      %19 = arith.divf %17, %18 : vector<8x1xf32>
      %20 = arith.mulf %15, %15 : vector<8x32xf32>
      %cst_12 = arith.constant dense<0.000000e+00> : vector<8xf32>
      %21 = vector.multi_reduction <add>, %20, %cst_12 [1] : vector<8x32xf32> to vector<8xf32>
      %22 = vector.shape_cast %21 : vector<8xf32> to vector<8x1xf32>
      %cst_13 = arith.constant 3.200000e+01 : f32
      %23 = vector.broadcast %cst_13 : f32 to vector<8x1xf32>
      %24 = arith.divf %22, %23 : vector<8x1xf32>
      %25 = arith.mulf %19, %19 : vector<8x1xf32>
      %26 = arith.subf %24, %25 : vector<8x1xf32>
      %cst_14 = arith.constant 0.000000e+00 : f32
      %27 = vector.broadcast %cst_14 : f32 to vector<8x1xf32>
      %28 = arith.maximumf %26, %27 : vector<8x1xf32>
      %29 = vector.broadcast %19 : vector<8x1xf32> to vector<8x32xf32>
      %30 = arith.subf %15, %29 : vector<8x32xf32>
      %cst_15 = arith.constant 9.99999974E-6 : f32
      %31 = vector.broadcast %cst_15 : f32 to vector<8x1xf32>
      %32 = arith.addf %28, %31 : vector<8x1xf32>
      %33 = math.rsqrt %32 : vector<8x1xf32>
      %34 = vector.broadcast %33 : vector<8x1xf32> to vector<8x32xf32>
      %35 = arith.mulf %30, %34 : vector<8x32xf32>
      %36 = vector.extract_strided_slice %9 {offsets = [1, 0], sizes = [1, 32], strides = [1, 1]} : vector<3x32xf32> to vector<1x32xf32>
      %37 = vector.broadcast %36 : vector<1x32xf32> to vector<8x32xf32>
      %38 = arith.mulf %35, %37 : vector<8x32xf32>
      %39 = vector.extract_strided_slice %9 {offsets = [2, 0], sizes = [1, 32], strides = [1, 1]} : vector<3x32xf32> to vector<1x32xf32>
      %40 = vector.broadcast %39 : vector<1x32xf32> to vector<8x32xf32>
      %41 = arith.addf %38, %40 : vector<8x32xf32>
      %cst_16 = arith.constant 5.000000e-01 : f32
      %42 = vector.broadcast %cst_16 : f32 to vector<8x32xf32>
      %43 = arith.mulf %42, %41 : vector<8x32xf32>
      %cst_17 = arith.constant 0.707106769 : f32
      %44 = vector.broadcast %cst_17 : f32 to vector<8x32xf32>
      %45 = arith.mulf %41, %44 : vector<8x32xf32>
      %46 = math.erf %45 : vector<8x32xf32>
      %cst_18 = arith.constant 1.000000e+00 : f32
      %47 = vector.broadcast %cst_18 : f32 to vector<8x32xf32>
      %48 = arith.addf %47, %46 : vector<8x32xf32>
      %49 = arith.mulf %43, %48 : vector<8x32xf32>
      %c0_19 = arith.constant 0 : index
      %c0_20 = arith.constant 0 : index
      %c0_21 = arith.constant 0 : index
      %50 = vector.load %arg6[%c0_19, %c0_20, %c0_21] : memref<1x32x128xf32, #tpu.memory_space<vmem>>, vector<1x32x128xf32>
      %51 = vector.shape_cast %50 : vector<1x32x128xf32> to vector<32x128xf32>
      %cst_22 = arith.constant dense<0.000000e+00> : vector<8x128xf32>
      %52 = tpu.matmul %49, %51, %cst_22 {dimension_numbers = #tpu.dot_dimension_numbers<[1], [0], [0], [1], [0, 0, 1, 1], [], []>} : vector<8x32xf32>, vector<32x128xf32>, vector<8x128xf32> -> vector<8x128xf32>
      %c0_23 = arith.constant 0 : index
      %c0_24 = arith.constant 0 : index
      %c0_25 = arith.constant 0 : index
      %53 = vector.load %arg7[%c0_23, %c0_24, %c0_25] : memref<1x1x128xf32, #tpu.memory_space<vmem>>, vector<1x1x128xf32>
      %54 = vector.shape_cast %53 : vector<1x1x128xf32> to vector<1x128xf32>
      %55 = vector.broadcast %54 : vector<1x128xf32> to vector<8x128xf32>
      %56 = arith.addf %52, %55 : vector<8x128xf32>
      %c0_26 = arith.constant 0 : index
      %c0_27 = arith.constant 0 : index
      %c0_28 = arith.constant 0 : index
      %57 = vector.load %arg8[%c0_26, %c0_27, %c0_28] : memref<1x8x128xf32, #tpu.memory_space<vmem>>, vector<1x8x128xf32>
      %58 = vector.shape_cast %57 : vector<1x8x128xf32> to vector<8x128xf32>
      %59 = vector.shape_cast %56 : vector<8x128xf32> to vector<1x8x128xf32>
      tpu.vector_store %arg8[%c0_26, %c0_27, %c0_28], %59 {strides = array<i32>} : memref<1x8x128xf32, #tpu.memory_space<vmem>>, vector<1x8x128xf32>,
    } else {
    }
    return
  }
  func.func @transform_0(%arg0: i32, %arg1: i32, %arg2: memref<2xi32, #tpu.memory_space<smem>>) -> (i32, i32, i32) {
    %c0_i32 = arith.constant 0 : i32
    %c0_i32_0 = arith.constant 0 : i32
    return %arg0, %arg1, %c0_i32 : i32, i32, i32
  }
  func.func @transform_1(%arg0: i32, %arg1: i32, %arg2: memref<2xi32, #tpu.memory_space<smem>>) -> (i32, i32, i32, i32) {
    %c0_i32 = arith.constant 0 : i32
    %c0_i32_0 = arith.constant 0 : i32
    %c0_i32_1 = arith.constant 0 : i32
    %c0_i32_2 = arith.constant 0 : i32
    return %arg0, %c0_i32, %c0_i32_0, %c0_i32_1 : i32, i32, i32, i32
  }
  func.func @transform_2(%arg0: i32, %arg1: i32, %arg2: memref<2xi32, #tpu.memory_space<smem>>) -> (i32, i32, i32, i32) {
    %c0_i32 = arith.constant 0 : i32
    %c0_i32_0 = arith.constant 0 : i32
    %c0_i32_1 = arith.constant 0 : i32
    %c0_i32_2 = arith.constant 0 : i32
    return %arg0, %c0_i32, %c0_i32_0, %c0_i32_1 : i32, i32, i32, i32
  }
  func.func @transform_3(%arg0: i32, %arg1: i32, %arg2: memref<2xi32, #tpu.memory_space<smem>>) -> (i32, i32, i32) {
    %c0_i32 = arith.constant 0 : i32
    %c0_i32_0 = arith.constant 0 : i32
    %c0_i32_1 = arith.constant 0 : i32
    return %arg0, %c0_i32, %c0_i32_0 : i32, i32, i32
  }
  func.func @transform_4(%arg0: i32, %arg1: i32, %arg2: memref<2xi32, #tpu.memory_space<smem>>) -> (i32, i32, i32) {
    %c0_i32 = arith.constant 0 : i32
    %c0_i32_0 = arith.constant 0 : i32
    %c0_i32_1 = arith.constant 0 : i32
    return %arg0, %c0_i32, %c0_i32_0 : i32, i32, i32
  }
  func.func @transform_5(%arg0: i32, %arg1: i32, %arg2: memref<2xi32, #tpu.memory_space<smem>>) -> (i32, i32, i32) {
    %c0_i32 = arith.constant 0 : i32
    %c0_i32_0 = arith.constant 0 : i32
    return %arg0, %arg1, %c0_i32 : i32, i32, i32
  }
}

</mosaic_0001>

<bundles_post_ra>
// kernel: tpu_custom_call.1
= control target key start
LH: loop header
LB: loop body
LE: loop exit
PB: predicated region body
PF: predicated region fallthrough
CT: control target
= control target key end

     0   :  { %s1518_s0 = inlined_call_operand.vmem [shape: s32[2], index: 0, kind: input, shape index: {}]   ;;  %s1519_s1 = inlined_call_operand.hbm [shape: f32[2,16,32], index: 1, kind: input, shape index: {}]   ;;  %s1520_s2 = inlined_call_operand.hbm [shape: f32[2,1,32,32], index: 2, kind: input, shape index: {}]   ;;  %s1521_s3 = inlined_call_operand.vmem [shape: f32[2,1,3,32], index: 3, kind: input, shape index: {}]   ;;  %s1522_s4 = inlined_call_operand.hbm [shape: f32[2,32,128], index: 4, kind: input, shape index: {}]   ;;  %s1523_s5 = inlined_call_operand.vmem [shape: f32[2,1,128], index: 5, kind: input, shape index: {}]   ;;  %s1524_s6 = inlined_call_operand.hbm [shape: f32[2,16,128], index: 6, kind: output, shape index: {}]  }
   0x1   :  { %1534 = sst [smem:[#allocation18_spill]] %s1520_s2  ;;  %s11_s23 = sshll.u32 %s1518_s0, 4  ;;  %s12_s23 = int_to_ptr.vmem [resolvable:$true] %s11_s23 }
   0x2   :  { %1535 = sst [smem:[#allocation19_spill]] %s1522_s4  ;;  %s895_s24 = scalar_lea.vmem %s12_s23, 16 }
   0x3   :  { %p896_p0 = scmp.ne.s32.totalorder %s12_s23, %s895_s24  ;;  %p900_p1 = scmp.lt.s32.totalorder %s12_s23, %s12_s23 }
   0x4   :  { %p901_p2 = scmp.lt.s32.totalorder %s895_s24, %s895_s24 }
   0x6   :  { %p902_p3 = por %p901_p2, %p900_p1 }
   0x8   :  { %p903_p4 = pnand %p902_p3, %p896_p0 }
   0xa   :  { %906 = shalt.err (!%p903_p4)  }
   0xb   :  { %s1127_s25 = smov [#allocation3]  }
   0xc   :  { %14 = dma.vmem_to_smem %s12_s23, 16, %s1127_s25, [#allocation2] }
   0xd   :  { %1069 = dma.done.wait [#allocation2], 16 }
   0xe   :  { %1070 = vsyncadd [#allocation2], 4294967280 }
   0xf   :  { %16 = sfence }
  0x10   :  { %17 = vsyncpa [#allocation5], 0 }
  0x11   :  { %19 = vsyncpa [#allocation5 + $0x1], 0 }
  0x12   :  { %20 = vsyncpa [#allocation8], 0 }
  0x13   :  { %21 = vsyncpa [#allocation6], 0 }
  0x14   :  { %23 = vsyncpa [#allocation6 + $0x1], 0  ;;  %s1175_s26 = smov 0   ;;  %s1177_s0 = smov 0  }
  0x15   :  { %s1179_s27 = smov 0   ;;  %s1181_s28 = smov 0  }
  0x16   :  { %s1183_s29 = smov 0   ;;  %s1185_s30 = smov 0  }
  0x17   :  { %s1187_s7 = smov 0   ;;  %s1189_s8 = smov 0  }
  0x18   :  { %s1191_s9 = smov 0   ;;  %s1193_s10 = smov 0  }
  0x19   :  { %s1195_s11 = smov 0  }
  0x1a LB: > { %1536 = sst [smem:[#allocation15_spill]] %s1089_s0  ;;  %s1525_s12 = sadd.s32 4294967295, %s1125_s11   ;;  %s1125_s11 = sphi %s1195_s11, %s29_s11   ;;  %s1121_s10 = sphi %s1193_s10, %s1566_s10   ;;  %s1117_s9 = sphi %s1191_s9, %s1565_s9   ;;  %s1113_s8 = sphi %s1189_s8, %s1564_s8   ;;  %s1109_s7 = sphi %s1187_s7, %s1563_s7   ;;  %s1105_s30 = sphi %s1185_s30, %s1562_s30   ;;  %s1101_s29 = sphi %s1183_s29, %s1561_s29   ;;  %s1097_s28 = sphi %s1181_s28, %s1560_s28   ;;  %s1093_s27 = sphi %s1179_s27, %s1559_s27   ;;  %s1089_s0 = sphi %s1177_s0, %s1558_s0   ;;  %s1085_s26 = sphi %s1175_s26, %s1555_s26  }
  0x1b   : > { %p89_p5 = scmp.ne.s32.totalorder %s1089_s0, %s1085_s26  ;;  %p1232_p6 = scmp.eq.s32.totalorder %s1525_s12, 0 }
  0x1c   : > { %p701_p7 = scmp.ge.s32.totalorder %s1125_s11, 1  ;;  %p206_p8 = scmp.lt.s32.totalorder %s1125_s11, 5 }
  0x1d   : > { %s1537_s13 = scalar_select %p1232_p6, 1, 0 }
  0x1e   : > { %s724_s14 = sshll.u32 %s1113_s8, 9  ;;  %p1241_p9 = por %p89_p5, %p1232_p6 }
  0x1f   : > { %p1245_p10 = pnand %p701_p7, %p206_p8  ;;  %s1540_s2 = sld [smem:[#allocation18_spill]] }
  0x20   : > { %s1538_s15 = scalar_select %p1241_p9, 1, 0 }
  0x21   : > { %s1539_s16 = scalar_select %p1245_p10, 1, 0 }
  0x22   : > { %s1128_s20 = smov [#allocation7]   ;;  %p778_p11 = pneg %p1245_p10 }
  0x23   : > { %s221_s21 = sshll.u32 %s1128_s20, 4  ;;  %s1542_s4 = sld [smem:[#allocation19_spill]]  ;;  %s1256_s21 = int_to_ptr.vmem [resolvable:$true] %s221_s21 }
  0x24   : > { %p1260_p12 = pnand %p778_p11, %p1241_p9  ;;  %s1129_s26 = smov [#allocation9]  }
  0x25   : > { %s1252_s19 = scalar_lea.hbm %s1540_s2, %s724_s14  ;;  %s1269_s17 = sshll.u32 %s1129_s26, 4  ;;  %s245_s17 = int_to_ptr.vmem [resolvable:$true] %s1269_s17 }
  0x26   : > { %s907_s18 = scalar_lea.hbm %s1252_s19, 512  ;;  %p909_p0 = pneg %p1260_p12 }
  0x27   : > { %p908_p13 = scmp.ne.s32.totalorder %s1252_s19, %s907_s18  ;;  %s912_s0 = scalar_lea.hbm %s1540_s2, 1024 }
  0x28   : > { %p913_p3 = scmp.lt.u32.totalorder %s1252_s19, %s1540_s2  ;;  %p914_p4 = scmp.lt.u32.totalorder %s912_s0, %s907_s18 }
  0x29   : > { %s1267_s25 = scalar_lea.hbm %s1542_s4, %s724_s14  ;;  %p910_p1 = pnand %p909_p0, %p908_p13 }
  0x2a   : > { %p915_p5 = por %p914_p4, %p913_p3  ;;  %p916_p7 = scmp.lt.u32.totalorder %s907_s18, %s1252_s19 }
  0x2b   : > { %p911_p2 = pneg %p910_p1 }
  0x2c   : > { %p917_p8 = por %p916_p7, %p915_p5 }
  0x2e   : > { %p918_p11 = pnand %p917_p8, %p911_p2 }
  0x30   : > { %921 = shalt.err (!%p918_p11)
}
  0x31   : > { %s922_s14 = scalar_lea.vmem %s1256_s21, 512  ;;  %p930_p10 = scmp.lt.s32.totalorder %s1256_s21, %s1256_s21 }
  0x32   : > { %p923_p13 = scmp.ne.s32.totalorder %s1256_s21, %s922_s14  ;;  %p931_p6 = scmp.lt.s32.totalorder %s922_s14, %s922_s14 }
  0x34   : > { %p925_p1 = pnand %p923_p13, %p909_p0  ;;  %p932_p3 = por %p931_p6, %p930_p10 }
  0x36   : > { %p926_p9 = pneg %p925_p1 }
  0x38   : > { %p933_p4 = pnand %p932_p3, %p926_p9 }
  0x3a   : > { %936 = shalt.err (!%p933_p4)
}
  0x3b   : > { %s1130_s0 = smov 128   ;;  %s1131_s12 = smov 8  }
  0x3c   : > { %781 = dma.hbm_to_vmem [thread:$0]  (!%p1260_p12), %s1252_s19, 512, %s1256_s21, [#allocation8], %s1130_s0, %s1130_s0, %s1131_s12  }
  0x3d   : > { %s937_s26 = scalar_lea.hbm %s1267_s25, 512  ;;  %s942_s23 = scalar_lea.hbm %s1542_s4, 1024 }
  0x3e   : > { %p938_p2 = scmp.ne.s32.totalorder %s1267_s25, %s937_s26  ;;  %p943_p10 = scmp.lt.u32.totalorder %s1267_s25, %s1542_s4 }
  0x3f   : > { %p944_p5 = scmp.lt.u32.totalorder %s942_s23, %s937_s26  ;;  %p946_p8 = scmp.lt.u32.totalorder %s937_s26, %s1267_s25 }
  0x40   : > { %p940_p6 = pnand %p938_p2, %p909_p0 }
  0x41   : > { %p945_p7 = por %p944_p5, %p943_p10 }
  0x42   : > { %p941_p9 = pneg %p940_p6 }
  0x43   : > { %p947_p11 = por %p946_p8, %p945_p7 }
  0x45   : > { %p948_p13 = pnand %p947_p11, %p941_p9 }
  0x47   : > { %951 = shalt.err (!%p948_p13)
}
  0x48   : > { %s952_s19 = scalar_lea.vmem %s245_s17, 512  ;;  %p960_p2 = scmp.lt.s32.totalorder %s245_s17, %s245_s17 }
  0x49   : > { %p953_p1 = scmp.ne.s32.totalorder %s245_s17, %s952_s19  ;;  %p961_p6 = scmp.lt.s32.totalorder %s952_s19, %s952_s19 }
  0x4b   : > { %p955_p3 = pnand %p953_p1, %p909_p0  ;;  %p962_p5 = por %p961_p6, %p960_p2 }
  0x4d   : > { %p956_p4 = pneg %p955_p3 }
  0x4f   : > { %p963_p10 = pnand %p962_p5, %p956_p4 }
  0x51   : > { %966 = shalt.err (!%p963_p10)
}
  0x52   : > { %784 = dma.hbm_to_vmem [thread:$0]  (!%p1260_p12), %s1267_s25, 512, %s245_s17, [#allocation8], %s1130_s0, %s1130_s0, %s1131_s12  }
  0x53   : > { %s38_s21 = sadd.s32 1, %s1117_s9  ;;  %s41_s22 = sadd.s32 1, %s1121_s10 }
  0x54   : > { %p39_p0 = scmp.ge.s32.totalorder %s38_s21, 2  ;;  %s700_s26 = sadd.s32 4294967294, %s1125_s11  }
  0x55   : > { %s50_s18 = sadd.s32 1, %s1105_s30  ;;  %p57_p9 = scmp.ne.s32.totalorder %s1105_s30, %s1101_s29 }
  0x56   : > { %s1568_s21 = smov (%p39_p0, %s38_s21), 0  ;;  %s1570_s22 = smov (!%p39_p0, %s41_s22), %s1121_s10 }
  0x57   : > { %1543 = sst [smem:[#allocation16_spill]] %s1568_s21  ;;  %s46_s20 = ssub.s32 %s1117_s9, %s1568_s21 }
  0x58   : > { %p43_p12 = scmp.ge.s32.totalorder %s1570_s22, 2  ;;  %p63_p7 = scmp.ne.s32.totalorder %s1101_s29, %s1097_s28 }
  0x59   : > { %p58_p8 = scmp.eq.s32.totalorder %s1125_s11, 0  ;;  %s76_s25 = sadd.s32 1, %s1093_s27 }
  0x5a   : > { %s1572_s22 = smov (%p43_p12, %s1570_s22), 0  ;;  %p1545_p11 = scmp.ne.s32.totalorder %s1537_s13, 0 }
  0x5b   : > { %1544 = sst [smem:[#allocation17_spill]] %s1572_s22  ;;  %s1547_s0 = sadd.s32 4294967295, %s1125_s11  }
  0x5c   : > { %p1339_p13 = por %p1545_p11, %p63_p7  ;;  %p193_p1 = scmp.eq.s32.totalorder %s1547_s0, 3 }
  0x5d   : > { %s45_s12 = ssub.s32 %s1121_s10, %s1572_s22  ;;  %p199_p3 = scmp.eq.s32.totalorder %s700_s26, 3 }
  0x5e   : > { %s47_s23 = sor.u32 %s46_s20, %s45_s12  ;;  %p74_p4 = scmp.eq.s32.totalorder %s45_s12, 0 }
  0x5f   : > { %p48_p2 = scmp.eq.s32.totalorder %s47_s23, 0  ;;  %p1350_p6 = por %p193_p1, %p57_p9 }
  0x60   : > { %s1355_s14 = scalar_select %p74_p4, %s1093_s27, %s76_s25  }
  0x61   : > { %s1548_s24 = scalar_select %p1350_p6, 1, 0 }
  0x62   : > { %s1358_s13 = scalar_select %p48_p2, %s1105_s30, %s50_s18  }
  0x63   : > { %p59_p5 = por %p58_p8, %p57_p9  ;;  %p1368_p10 = por %p199_p3, %p63_p7 }
  0x64   : > { %s264_s26 = sand.u32 1, %s1105_s30   ;;  %s708_s20 = sshll.u32 %s1121_s10, 1 }
  0x65   : > { %s1549_s19 = scalar_select %p1368_p10, 1, 0 }
  0x66   : > { %p793_p0 = scmp.lt.s32.totalorder %s1125_s11, 4  ;;  %s707_s0 = sshll.u32 %s264_s26, 3 }
  0x67   : > { %s273_s12 = sadd.s32 %s1117_s9, %s708_s20  ;;  %s268_s2 = scalar_lea.vmem [#allocation4], %s707_s0 }
  0x68   : > { %s709_s23 = sshll.u32 %s273_s12, 7  ;;  %s277_s4 = sshll.u32 %s268_s2, 4  ;;  %s1381_s4 = int_to_ptr.vmem [resolvable:$true] %s277_s4 }
  0x69   : > { %s1379_s18 = scalar_lea.hbm %s1519_s1, %s709_s23  ;;  %p1383_p9 = pnand %p793_p0, %p59_p5 }
  0x6a   : > { %s265_s20 = scalar_lea.sflag [#allocation5], %s264_s26  ;;  %s967_s0 = scalar_lea.hbm %s1379_s18, 128 }
  0x6b   : > { %p968_p12 = scmp.ne.s32.totalorder %s1379_s18, %s967_s0  ;;  %p969_p7 = pneg %p1383_p9 }
  0x6c   : > { %s972_s12 = scalar_lea.hbm %s1519_s1, 512  ;;  %p973_p1 = scmp.lt.u32.totalorder %s1379_s18, %s1519_s1 }
  0x6d   : > { %p970_p8 = pnand %p969_p7, %p968_p12  ;;  %p974_p3 = scmp.lt.u32.totalorder %s972_s12, %s967_s0 }
  0x6e   : > { %p976_p2 = scmp.lt.u32.totalorder %s967_s0, %s1379_s18 }
  0x6f   : > { %p971_p11 = pneg %p970_p8  ;;  %p975_p4 = por %p974_p3, %p973_p1 }
  0x71   : > { %p977_p5 = por %p976_p2, %p975_p4 }
  0x73   : > { %p978_p0 = pnand %p977_p5, %p971_p11 }
  0x75   : > { %981 = shalt.err (!%p978_p0)
}
  0x76   : > { %s982_s26 = scalar_lea.vmem %s1381_s4, 128  ;;  %s1132_s2 = smov [#allocation4]  }
  0x77   : > { %p983_p12 = scmp.ne.s32.totalorder %s1381_s4, %s982_s26  ;;  %s987_s22 = sshll.u32 %s1132_s2, 4  ;;  %s988_s22 = int_to_ptr.vmem [resolvable:$false] %s987_s22 }
  0x78   : > { %s989_s23 = scalar_lea.vmem %s988_s22, 256  ;;  %p990_p6 = scmp.lt.s32.totalorder %s1381_s4, %s988_s22 }
  0x79   : > { %p985_p8 = pnand %p983_p12, %p969_p7  ;;  %p991_p1 = scmp.lt.s32.totalorder %s989_s23, %s982_s26 }
  0x7b   : > { %p986_p10 = pneg %p985_p8  ;;  %p992_p3 = por %p991_p1, %p990_p6 }
  0x7d   : > { %p993_p4 = pnand %p992_p3, %p986_p10 }
  0x7f   : > { %996 = shalt.err (!%p993_p4)
}
  0x80   : > { %788 = dma.hbm_to_vmem [thread:$0]  (!%p1383_p9), %s1379_s18, 128, %s1381_s4, %s265_s20  }
  0x81   : > { %p1551_p11 = scmp.ne.s32.totalorder %s1539_s16, 0 }
  0x82   : > { %s1415_s0 = sand.u32 (!%p1551_p11), 1, %s1101_s29  }
  0x83   : > { %286 = sbr.rel (%p1551_p11) target bundleno = 803 (0x323), region = 40  ;;  %s711_s12 = sshll.u32 (!%p1551_p11), %s1415_s0, 3 }
  0x84   : > { %s289_s25 = scalar_lea.sflag (!%p1551_p11), [#allocation5], %s1415_s0  ;;  %s1419_s26 = scalar_lea.vmem (!%p1551_p11), [#allocation4], %s711_s12 }
  0x8a   : > { %1072 = dma.done.wait (%p1339_p13), %s289_s25, 128  }
  0x8b   : > { %1074 = vsyncadd (%p1339_p13), %s289_s25, 4294967168  ;;  %p1552_p6 = scmp.ne.s32.totalorder %s1538_s15, 0 }
  0x8d   : > { %1076 = dma.done.wait (%p1552_p6), [#allocation8], 1024  }
  0x8e   : > { %1078 = vsyncadd (%p1552_p6), [#allocation8], 4294966272  ;;  %p334_p10 = scmp.lt.s32.totalorder %s1113_s8, 1  ;;  %s342_s4 = sld [smem:[#allocation3 + %s1113_s8]] }
  0x8f   : > { %s714_s16 = sshll.u32 %s1109_s7, 3  ;;  %s1443_s25 = scalar_lea.vmem [#allocation10], %s711_s12 }
  0x90   : > { %s1433_s21 = scalar_select %p334_p10, %s1113_s8, 1 }
  0x92   : > { %s713_s18 = sshll.u32 %s1433_s21, 2  ;;  %s340_s2 = scalar_lea.vmem %s1523_s5, %s1433_s21 }
  0x93   : > { %s337_s15 = scalar_lea.vmem %s1521_s3, %s713_s18 }
  0x94   : > { %p715_p13 = scmp.ge.s32.totalorder %s714_s16, %s342_s4 }
  0x95   : > { %v349_v0 = vld [vmem:[#allocation7] sm:$0xff] (!%p715_p13)  ;;  %v350_v1 = vld [vmem:[#allocation7 + $0x8] sm:$0xff] (!%p715_p13)  ;;  %v351_v2 = vld [vmem:[#allocation7 + $0x10] sm:$0xff] (!%p715_p13)  ;;  %v1133_v3 = vmov (!%p715_p13), 0.0|0.0   ;;  %vm1134_vm0 = vmmov (!%p715_p13), 0   ;;  %v1135_v6 = vmov (!%p715_p13), 0.0   ;;  %v353_v9 = vlaneseq (!%p715_p13) }
  0x96   : > { %346 = sbr.rel (%p715_p13) target bundleno = 777 (0x309), region = 56  ;;  %758 = vmatprep.subr.bf16.mxu0 (!%p715_p13), %v1133_v3  ;;  %v759_v4 = vpack.c.bf16 (!%p715_p13), %v350_v1, %v349_v0  ;;  %v352_v5 = vld [vmem:[#allocation7 + $0x18] sm:$0xff] (!%p715_p13)  ;;  %744 = vmatprep.mubr.msk.f32.mxu0 (!%p715_p13), %vm1134_vm0, %v1135_v6  ;;  %vm357_vm1 = vcmask (!%p715_p13), 261120   ;;  %v348_v12 = vld [vmem:[%s337_s15] sm:$0x7] (!%p715_p13)  ;;  %v463_v20 = vld [vmem:[#allocation9] sm:$0xff] (!%p715_p13) }
  0x97   : > { %764 = vmatprep.subr.bf16.mxu1 (!%p715_p13), %v1133_v3  ;;  %755 = vmatprep.mubr.msk.f32.mxu1 (!%p715_p13), %vm1134_vm0, %v1135_v6  ;;  %v762_v7 = vpack.c.bf16 (!%p715_p13), %v352_v5, %v351_v2  ;;  %v347_v8 = vld [vmem:[%s1419_s26] sm:$0xff] (!%p715_p13)  ;;  %v354_v10 = vshrl.u32 (!%p715_p13), %v353_v9, 7  ;;  %v464_v21 = vld [vmem:[#allocation9 + $0x8] sm:$0xff] (!%p715_p13) }
  0x98   : > { %760 = vmatpush3.bf16.msra.mxu0 (!%p715_p13), %v759_v4  ;;  %v465_v22 = vld [vmem:[#allocation9 + $0x10] sm:$0xff] (!%p715_p13)  ;;  %v765_v23 = vpack.c.bf16 (!%p715_p13), %v464_v21, %v463_v20  ;;  %v466_v24 = vld [vmem:[#allocation9 + $0x18] sm:$0xff] (!%p715_p13) }
  0x99   : > { %761 = vmatprep.subr.bf16.mxu0 (!%p715_p13), %v1133_v3  ;;  %v355_v11 = vsub.s32 (!%p715_p13), 0, %v354_v10  ;;  %v768_v25 = vpack.c.bf16 (!%p715_p13), %v466_v24, %v465_v22  ;;  %v450_v34 = vsub.s32 (!%p715_p13), 1, %v354_v10  ;;  %v455_v35 = vsub.s32 (!%p715_p13), 2, %v354_v10  ;;  %v717_v48 = vld [vmem:[%s340_s2] ss:$0 sm:$0xff] (!%p715_p13) }
  0x9a   : > { %766 = vmatpush3.bf16.msra.mxu1 (!%p715_p13), %v765_v23 }
  0x9b   : > { %v356_v13 = vrot.slane (!%p715_p13), %v348_v12, %v355_v11  ;;  %767 = vmatprep.subr.bf16.mxu1 (!%p715_p13), %v1133_v3  ;;  %v451_v36 = vrot.slane (!%p715_p13), %v348_v12, %v450_v34  ;;  %v456_v39 = vrot.slane (!%p715_p13), %v348_v12, %v455_v35 }
  0x9c   : > { %763 = vmatpush3.bf16.msra.mxu0 (!%p715_p13), %v762_v7 }
  0x9e   : > { %769 = vmatpush3.bf16.msra.mxu1 %v768_v25 }
  0x9f   : > { %745 = vmatmul.mubr.msk.f32.vlgmr.msra.gmra.mrb[0].mxu0 %vm357_vm1, %v347_v8 }
 0x172   : > { %v427_v14 = vpop.f32.mrb[0].mxu0 }
 0x173   : > { %v428_v15 = vadd.f32 %v427_v14, %v356_v13  ;;  %v746_v16 = vpop.f32.mrb[1].mxu0 }
 0x175   : > { %v431_v17 = vsel %vm357_vm1, %v428_v15, 0.0  ;;  %v436_v18 = vmul.f32 %v428_v15, %v428_v15 }
 0x176   : > { %432 = vadd.xlane.f32.xlu0 %v431_v17 }
 0x177   : > { %v437_v19 = vsel %vm357_vm1, %v436_v18, 0.0 }
 0x17a   : > { %438 = vadd.xlane.f32.xlu0 %v437_v19 }
 0x203   : > { %v433_v26 = vpop.xlane.xlu0 %432 }
 0x204   : > { %v435_v27 = vmul.f32 0.03125, %v433_v26 }
 0x206   : > { %v441_v29 = vmul.f32 %v435_v27, %v435_v27  ;;  %v444_v37 = vsub.f32 %v428_v15, %v435_v27 }
 0x207   : > { %v439_v28 = vpop.xlane.xlu0 %438 }
 0x208   : > { %v440_v30 = vmul.f32 0.03125, %v439_v28 }
 0x20a   : > { %v442_v31 = vsub.f32 %v440_v30, %v441_v29 }
 0x20c   : > { %v443_v32 = vmax.f32 %v442_v31, 0.0 }
 0x20e   : > { %v445_v33 = vadd.f32 1e-05, %v443_v32 }
 0x210   : > { %891 = vrsqrt.f32 %v445_v33 }
 0x21a   : > { %v892_v38 = vpop.eup %891 }
 0x21b   : > { %v447_v40 = vmul.f32 %v892_v38, %v444_v37 }
 0x21d   : > { %v452_v41 = vmul.f32 %v451_v36, %v447_v40 }
 0x21f   : > { %v457_v42 = vadd.f32 %v456_v39, %v452_v41 }
 0x221   : > { %v459_v43 = vmul.f32 0.70710677, %v457_v42  ;;  %v458_v45 = vmul.f32 0.5, %v457_v42 }
 0x223   : > { %893 = verf.f32 %v459_v43 }
 0x22d   : > { %v894_v44 = vpop.eup %893 }
 0x22e   : > { %v461_v46 = vadd.f32 1.0, %v894_v44 }
 0x230   : > { %v462_v47 = vmul.f32 %v461_v46, %v458_v45 }
 0x232   : > { %756 = vmatmul.mubr.msk.f32.vlgmr.msra.gmra.mrb[0].mxu1 %vm357_vm1, %v462_v47 }
 0x305   : > { %v543_v49 = vpop.f32.mrb[0].mxu1 }
 0x306   : > { %v544_v50 = vadd.f32 %v717_v48, %v543_v49  ;;  %v757_v51 = vpop.f32.mrb[1].mxu1 }
 0x308   : > { %547 = vst [vmem:[%s1443_s25] sm:$0xff] %v544_v50 }
 0x309 PF: > { %s720_s4 = sshll.u32 %s1113_s8, 1  ;;  %s564_s18 = sshll.u32 %s1443_s25, 4  ;;  %s1459_s18 = int_to_ptr.vmem [resolvable:$true] %s564_s18 }
 0x30a   : > { %s560_s16 = sadd.s32 %s1109_s7, %s720_s4  ;;  %s549_s2 = scalar_lea.sflag [#allocation6], %s1415_s0 }
 0x30b   : > { %s721_s17 = sshll.u32 %s560_s16, 7  ;;  %s997_s23 = scalar_lea.vmem %s1459_s18, 128 }
 0x30c   : > { %s562_s21 = scalar_lea.hbm %s1524_s6, %s721_s17  ;;  %p998_p9 = scmp.ne.s32.totalorder %s1459_s18, %s997_s23 }
 0x30d   : > { %p1553_p7 = scmp.ne.s32.totalorder %s1548_s24, 0  ;;  %s1136_s15 = smov [#allocation10]  }
 0x30e   : > { %s1001_s8 = sshll.u32 %s1136_s15, 4  ;;  %s1002_s8 = int_to_ptr.vmem [resolvable:$false] %s1001_s8 }
 0x30f   : > { %p999_p2 = pnand %p998_p9, %p1553_p7  ;;  %s1003_s7 = scalar_lea.vmem %s1002_s8, 256 }
 0x310   : > { %p1004_p0 = scmp.lt.s32.totalorder %s1459_s18, %s1002_s8  ;;  %p1005_p12 = scmp.lt.s32.totalorder %s1003_s7, %s997_s23 }
 0x311   : > { %p1000_p5 = pneg %p999_p2 }
 0x312   : > { %p1006_p8 = por %p1005_p12, %p1004_p0 }
 0x314   : > { %p1007_p1 = pnand %p1006_p8, %p1000_p5 }
 0x316   : > { %1010 = shalt.err (!%p1007_p1)
}
 0x317   : > { %s1011_s25 = scalar_lea.hbm %s562_s21, 128  ;;  %s1015_s26 = scalar_lea.hbm %s1524_s6, 512 }
 0x318   : > { %p1012_p3 = scmp.ne.s32.totalorder %s562_s21, %s1011_s25  ;;  %p1016_p6 = scmp.lt.u32.totalorder %s562_s21, %s1524_s6 }
 0x319   : > { %p1017_p10 = scmp.lt.u32.totalorder %s1015_s26, %s1011_s25  ;;  %p1019_p9 = scmp.lt.u32.totalorder %s1011_s25, %s562_s21 }
 0x31a   : > { %p1013_p4 = pnand %p1012_p3, %p1553_p7 }
 0x31b   : > { %p1018_p13 = por %p1017_p10, %p1016_p6 }
 0x31c   : > { %p1014_p11 = pneg %p1013_p4 }
 0x31d   : > { %p1020_p2 = por %p1019_p9, %p1018_p13 }
 0x31f   : > { %p1021_p5 = pnand %p1020_p2, %p1014_p11 }
 0x321   : > { %1024 = shalt.err (!%p1021_p5)
}
 0x322   : > { %776 = dma.vmem_to_hbm [thread:$0]  (%p1553_p7), %s1459_s18, 128, %s562_s21, %s549_s2  }
 0x323 PF: > { %p794_p0 = scmp.ge.s32.totalorder %s1125_s11, 2  ;;  %s576_s17 = sand.u32 1, %s1097_s28  }
 0x324   : > { %p1554_p12 = scmp.ne.s32.totalorder %s1549_s19, 0  ;;  %s577_s20 = scalar_lea.sflag [#allocation6], %s576_s17 }
 0x326   : > { %p790_p8 = pnand %p794_p0, %p1554_p12 }
 0x328   : > { %1080 = dma.done.wait (!%p790_p8), %s577_s20, 128  }
 0x329   : > { %1082 = vsyncadd (!%p790_p8), %s577_s20, 4294967168  ;;  %s29_s11 = sadd.s32 1, %s1125_s11   ;;  %s1555_s26 = sld [smem:[#allocation15_spill]] }
 0x32a   : > { %p26_p1 = scmp.ge.s32.totalorder %s29_s11, 6   ;;  %s1556_s24 = sld [smem:[#allocation16_spill]] }
 0x32b   : > { %s1557_s18 = sld [smem:[#allocation17_spill]]  ;;  %s1558_s0 = smov %s1093_s27 }
 0x32c   : > { %s1559_s27 = smov %s1355_s14  ;;  %s1560_s28 = smov %s1101_s29 }
 0x32d   : > { %s1561_s29 = smov %s1105_s30  ;;  %s1562_s30 = smov %s1358_s13 }
 0x32e   : > { %s1563_s7 = smov %s1117_s9  ;;  %s1564_s8 = smov %s1121_s10 }
 0x32f   :  { %28 = sbr.rel (!%p26_p1) target bundleno = 26 (0x1a), region = 105 }
 0x330   : > { %s1565_s9 = smov %s1556_s24 }
 0x331   : > { %s1566_s10 = smov %s1557_s18 }
 0x336   :  { %582 = vsyncpa [#allocation5], 1 }
 0x337   :  { %584 = vsyncpa [#allocation5 + $0x1], 1 }
 0x338   :  { %585 = vsyncpa [#allocation8], 1 }
 0x339   :  { %586 = vsyncpa [#allocation6], 1 }
 0x33a   :  { %588 = vsyncpa [#allocation6 + $0x1], 1 }

// kernel: tpu_custom_call.1
= control target key start
LH: loop header
LB: loop body
LE: loop exit
PB: predicated region body
PF: predicated region fallthrough
CT: control target
= control target key end

     0   :  { %s1607_s0 = inlined_call_operand.vmem [shape: s32[2], index: 0, kind: input, shape index: {}]   ;;  %s1608_s1 = inlined_call_operand.hbm [shape: f32[2,16,32], index: 1, kind: input, shape index: {}]   ;;  %s1609_s2 = inlined_call_operand.hbm [shape: f32[2,1,32,32], index: 2, kind: input, shape index: {}]   ;;  %s1610_s3 = inlined_call_operand.vmem [shape: f32[2,1,3,32], index: 3, kind: input, shape index: {}]   ;;  %s1611_s4 = inlined_call_operand.hbm [shape: f32[2,32,128], index: 4, kind: input, shape index: {}]   ;;  %s1612_s5 = inlined_call_operand.vmem [shape: f32[2,1,128], index: 5, kind: input, shape index: {}]   ;;  %s1613_s6 = inlined_call_operand.hbm [shape: f32[2,16,128], index: 6, kind: output, shape index: {}]  }
   0x1   :  { %1628 = sst [smem:[#allocation22_spill]] %s1609_s2  ;;  %s11_s23 = sshll.u32 %s1607_s0, 4  ;;  %s12_s23 = int_to_ptr.vmem [resolvable:$true] %s11_s23 }
   0x2   :  { %1629 = sst [smem:[#allocation23_spill]] %s1610_s3  ;;  %s942_s24 = scalar_lea.vmem %s12_s23, 16 }
   0x3   :  { %1630 = sst [smem:[#allocation24_spill]] %s1612_s5  ;;  %p943_p0 = scmp.ne.s32.totalorder %s12_s23, %s942_s24 }
   0x4   :  { %1631 = sst [smem:[#allocation25_spill]] %s1613_s6  ;;  %p947_p1 = scmp.lt.s32.totalorder %s12_s23, %s12_s23 }
   0x5   :  { %p948_p2 = scmp.lt.s32.totalorder %s942_s24, %s942_s24 }
   0x7   :  { %p949_p3 = por %p948_p2, %p947_p1 }
   0x9   :  { %p950_p4 = pnand %p949_p3, %p943_p0 }
   0xb   :  { %953 = shalt.err (!%p950_p4)  }
   0xc   :  { %s1174_s25 = smov [#allocation3]  }
   0xd   :  { %14 = dma.vmem_to_smem %s12_s23, 16, %s1174_s25, [#allocation2] }
   0xe   :  { %1116 = dma.done.wait [#allocation2], 16 }
   0xf   :  { %1117 = vsyncadd [#allocation2], 4294967280 }
  0x10   :  { %16 = sfence }
  0x11   :  { %17 = vsyncpa [#allocation5], 0 }
  0x12   :  { %19 = vsyncpa [#allocation5 + $0x1], 0 }
  0x13   :  { %20 = vsyncpa [#allocation8], 0 }
  0x14   :  { %22 = vsyncpa [#allocation8 + $0x1], 0 }
  0x15   :  { %23 = vsyncpa [#allocation6], 0 }
  0x16   :  { %25 = vsyncpa [#allocation6 + $0x1], 0  ;;  %s1222_s0 = smov 0   ;;  %s1224_s26 = smov 0  }
  0x17   :  { %s1226_s27 = smov 0   ;;  %s1228_s28 = smov 0  }
  0x18   :  { %s1230_s29 = smov 0   ;;  %s1232_s30 = smov 0  }
  0x19   :  { %s1234_s7 = smov 0   ;;  %s1236_s8 = smov 0  }
  0x1a   :  { %s1238_s9 = smov 0   ;;  %s1240_s10 = smov 0  }
  0x1b   :  { %s1242_s11 = smov 0  }
  0x1c LB: > { %1632 = sst [smem:[#allocation15_spill]] %s1156_s7  ;;  %p60_p5 = scmp.eq.s32.totalorder %s1172_s11, 0  ;;  %s1172_s11 = sphi %s1242_s11, %s31_s11   ;;  %s1168_s10 = sphi %s1240_s10, %s1681_s10   ;;  %s1164_s9 = sphi %s1238_s9, %s1680_s9   ;;  %s1160_s8 = sphi %s1236_s8, %s1679_s8   ;;  %s1156_s7 = sphi %s1234_s7, %s1678_s7   ;;  %s1152_s30 = sphi %s1232_s30, %s1677_s30   ;;  %s1148_s29 = sphi %s1230_s29, %s1676_s29   ;;  %s1144_s28 = sphi %s1228_s28, %s1675_s28   ;;  %s1140_s27 = sphi %s1226_s27, %s1674_s27   ;;  %s1136_s26 = sphi %s1224_s26, %s1673_s26   ;;  %s1132_s0 = sphi %s1222_s0, %s1672_s0  }
  0x1d   : > { %1633 = sst [smem:[#allocation16_spill]] %s1160_s8  ;;  %p85_p6 = scmp.ne.s32.totalorder %s1140_s27, %s1136_s26 }
  0x1e   : > { %p1614_p9 = scmp.lt.s32.totalorder %s1172_s11, 4  ;;  %s241_s12 = sand.u32 1, %s1172_s11  }
  0x1f   : > { %p87_p8 = por %p85_p6, %p60_p5  ;;  %s243_s13 = sand.u32 1, %s1140_s27  }
  0x20   : > { %s1287_s14 = sshll.u32 %s243_s13, 5  ;;  %s774_s15 = sshll.u32 %s1168_s10, 9 }
  0x21   : > { %s1634_s2 = sld [smem:[#allocation22_spill]]  ;;  %s245_s19 = scalar_lea.vmem [#allocation7], %s1287_s14 }
  0x22   : > { %s252_s20 = sshll.u32 %s245_s19, 4  ;;  %p1302_p10 = pnand %p1614_p9, %p87_p8  ;;  %s1298_s20 = int_to_ptr.vmem [resolvable:$true] %s252_s20 }
  0x23   : > { %s1306_s22 = scalar_lea.sflag [#allocation8], %s241_s12 }
  0x24   : > { %p1619_p12 = pneg %p1302_p10 }
  0x27   : > { %s1295_s18 = scalar_lea.hbm %s1634_s2, %s774_s15  ;;  %s959_s13 = scalar_lea.hbm %s1634_s2, 1024 }
  0x28   : > { %s954_s23 = scalar_lea.hbm %s1295_s18, 512  ;;  %p960_p1 = scmp.lt.u32.totalorder %s1295_s18, %s1634_s2 }
  0x29   : > { %p955_p11 = scmp.ne.s32.totalorder %s1295_s18, %s954_s23  ;;  %p961_p2 = scmp.lt.u32.totalorder %s959_s13, %s954_s23 }
  0x2a   : > { %p963_p4 = scmp.lt.u32.totalorder %s954_s23, %s1295_s18 }
  0x2b   : > { %p957_p13 = pnand %p1619_p12, %p955_p11  ;;  %p962_p3 = por %p961_p2, %p960_p1 }
  0x2d   : > { %p958_p0 = pneg %p957_p13  ;;  %p964_p6 = por %p963_p4, %p962_p3 }
  0x2f   : > { %p965_p8 = pnand %p964_p6, %p958_p0 }
  0x31   : > { %968 = shalt.err (!%p965_p8)
}
  0x32   : > { %s969_s12 = scalar_lea.vmem %s1298_s20, 512  ;;  %s1175_s19 = smov [#allocation7]  }
  0x33   : > { %p970_p11 = scmp.ne.s32.totalorder %s1298_s20, %s969_s12  ;;  %s974_s24 = sshll.u32 %s1175_s19, 4  ;;  %s975_s24 = int_to_ptr.vmem [resolvable:$false] %s974_s24 }
  0x34   : > { %s976_s25 = scalar_lea.vmem %s975_s24, 1024  ;;  %p977_p7 = scmp.lt.s32.totalorder %s1298_s20, %s975_s24 }
  0x35   : > { %p972_p13 = pnand %p970_p11, %p1619_p12  ;;  %p978_p1 = scmp.lt.s32.totalorder %s976_s25, %s969_s12 }
  0x37   : > { %p973_p9 = pneg %p972_p13  ;;  %p979_p2 = por %p978_p1, %p977_p7 }
  0x39   : > { %p980_p3 = pnand %p979_p2, %p973_p9 }
  0x3b   : > { %983 = shalt.err (!%p980_p3)
}
  0x3c   : > { %s1615_s23 = smov 128   ;;  %s1616_s13 = smov 8  }
  0x3d   : > { %834 = dma.hbm_to_vmem [thread:$0]  (!%p1302_p10), %s1295_s18, 512, %s1298_s20, %s1306_s22, %s1615_s23, %s1615_s23, %s1616_s13  }
  0x3e   : > { %s1342_s12 = scalar_lea.hbm %s1611_s4, %s774_s15  ;;  %s273_s19 = scalar_lea.vmem [#allocation9], %s1287_s14 }
  0x3f   : > { %s280_s24 = sshll.u32 %s273_s19, 4  ;;  %p758_p7 = scmp.ge.s32.totalorder %s1172_s11, 1  ;;  %s1345_s24 = int_to_ptr.vmem [resolvable:$true] %s280_s24 }
  0x40   : > { %p294_p9 = scmp.lt.s32.totalorder %s1172_s11, 5  ;;  %s1354_s20 = sadd.s32 4294967295, %s1172_s11  }
  0x41   : > { %s746_s15 = sadd.s32 4294967294, %s1172_s11   ;;  %s40_s14 = sadd.s32 1, %s1164_s9 }
  0x42   : > { %p1349_p0 = pnand %p758_p7, %p294_p9  ;;  %s43_s25 = sadd.s32 1, %s1168_s10 }
  0x43   : > { %p41_p4 = scmp.ge.s32.totalorder %s40_s14, 2  ;;  %s52_s16 = sadd.s32 1, %s1152_s30 }
  0x44   : > { %s1636_s18 = scalar_select %p1349_p0, 1, 0 }
  0x45   : > { %p59_p6 = scmp.ne.s32.totalorder %s1152_s30, %s1148_s29  ;;  %p65_p8 = scmp.ne.s32.totalorder %s1148_s29, %s1144_s28 }
  0x46   : > { %s1683_s14 = smov (%p41_p4, %s40_s14), 0  ;;  %s1685_s25 = smov (!%p41_p4, %s43_s25), %s1168_s10 }
  0x47   : > { %1637 = sst [smem:[#allocation17_spill]] %s1683_s14  ;;  %s48_s17 = ssub.s32 %s1164_s9, %s1683_s14 }
  0x48   : > { %p1374_p11 = por %p60_p5, %p59_p6  ;;  %p45_p13 = scmp.ge.s32.totalorder %s1685_s25, 2 }
  0x49   : > { %p66_p1 = scmp.eq.s32.totalorder %s1354_s20, 0  ;;  %s78_s23 = sadd.s32 1, %s1140_s27 }
  0x4a   : > { %p195_p2 = scmp.eq.s32.totalorder %s1354_s20, 3  ;;  %s1687_s25 = smov (%p45_p13, %s1685_s25), 0 }
  0x4b   : > { %1639 = sst [smem:[#allocation18_spill]] %s1687_s25  ;;  %p1386_p3 = por %p66_p1, %p65_p8 }
  0x4c   : > { %p1641_p5 = scmp.ne.s32.totalorder %s1136_s26, %s1132_s0  ;;  %s47_s14 = ssub.s32 %s1168_s10, %s1687_s25 }
  0x4d   : > { %s1640_s13 = scalar_select %p1386_p3, 1, 0 }
  0x4e   : > { %p1393_p7 = por %p1641_p5, %p66_p1  ;;  %p1402_p9 = por %p195_p2, %p59_p6 }
  0x4f   : > { %s49_s3 = sor.u32 %s48_s17, %s47_s14  ;;  %p76_p4 = scmp.eq.s32.totalorder %s47_s14, 0 }
  0x50   : > { %s1642_s2 = scalar_select %p1393_p7, 1, 0 }
  0x51   : > { %s1643_s6 = scalar_select %p1402_p9, 1, 0 }
  0x52   : > { %p50_p13 = scmp.eq.s32.totalorder %s49_s3, 0  ;;  %p201_p12 = scmp.eq.s32.totalorder %s746_s15, 3 }
  0x53   : > { %1644 = sst [smem:[#allocation19_spill]] %s1643_s6  ;;  %s1624_s6 = sand.u32 1, %s1152_s30  }
  0x54   : > { %s1407_s0 = scalar_select %p76_p4, %s1140_s27, %s78_s23  }
  0x55   : > { %s1410_s5 = scalar_select %p50_p13, %s1152_s30, %s52_s16  }
  0x56   : > { %1645 = sst [smem:[#allocation20_spill]] %s1407_s0  ;;  %p1415_p1 = por %p201_p12, %p65_p8 }
  0x57   : > { %1646 = sst [smem:[#allocation21_spill]] %s1410_s5  ;;  %s749_s17 = sshll.u32 %s1624_s6, 3 }
  0x58   : > { %s1647_s25 = scalar_select %p1415_p1, 1, 0 }
  0x59   : > { %s750_s7 = sshll.u32 %s1168_s10, 1  ;;  %s225_s3 = scalar_lea.vmem [#allocation4], %s749_s17 }
  0x5a   : > { %s230_s14 = sadd.s32 %s1164_s9, %s750_s7  ;;  %s234_s8 = sshll.u32 %s225_s3, 4  ;;  %s1424_s8 = int_to_ptr.vmem [resolvable:$true] %s234_s8 }
  0x5b   : > { %s751_s15 = sshll.u32 %s230_s14, 7  ;;  %p1648_p12 = scmp.lt.s32.totalorder %s1172_s11, 4 }
  0x5c   : > { %s1429_s5 = scalar_lea.hbm %s1608_s1, %s751_s15  ;;  %s984_s6 = scalar_lea.hbm %s1342_s12, 512 }
  0x5d   : > { %p1435_p6 = pnand %p1648_p12, %p1374_p11  ;;  %p985_p8 = scmp.ne.s32.totalorder %s1342_s12, %s984_s6 }
  0x5e   : > { %p1650_p2 = pneg %p1302_p10  ;;  %s989_s14 = scalar_lea.hbm %s1611_s4, 1024 }
  0x5f   : > { %p990_p13 = scmp.lt.u32.totalorder %s1342_s12, %s1611_s4  ;;  %p991_p1 = scmp.lt.u32.totalorder %s989_s14, %s984_s6 }
  0x60   : > { %p987_p5 = pnand %p985_p8, %p1650_p2  ;;  %p993_p11 = scmp.lt.u32.totalorder %s984_s6, %s1342_s12 }
  0x61   : > { %p992_p9 = por %p991_p1, %p990_p13 }
  0x62   : > { %p988_p4 = pneg %p987_p5 }
  0x63   : > { %p994_p12 = por %p993_p11, %p992_p9 }
  0x65   : > { %p995_p7 = pnand %p994_p12, %p988_p4 }
  0x67   : > { %998 = shalt.err (!%p995_p7)
}
  0x68   : > { %s999_s19 = scalar_lea.vmem %s1345_s24, 512  ;;  %s1178_s15 = smov [#allocation9]  }
  0x69   : > { %p1000_p8 = scmp.ne.s32.totalorder %s1345_s24, %s999_s19  ;;  %s1004_s16 = sshll.u32 %s1178_s15, 4  ;;  %s1005_s16 = int_to_ptr.vmem [resolvable:$false] %s1004_s16 }
  0x6a   : > { %s1006_s7 = scalar_lea.vmem %s1005_s16, 1024  ;;  %p1007_p0 = scmp.lt.s32.totalorder %s1345_s24, %s1005_s16 }
  0x6b   : > { %p1002_p5 = pnand %p1000_p8, %p1650_p2  ;;  %p1008_p1 = scmp.lt.s32.totalorder %s1006_s7, %s999_s19 }
  0x6d   : > { %p1003_p3 = pneg %p1002_p5  ;;  %p1009_p13 = por %p1008_p1, %p1007_p0 }
  0x6f   : > { %p1010_p9 = pnand %p1009_p13, %p1003_p3 }
  0x71   : > { %1013 = shalt.err (!%p1010_p9)
}
  0x72   : > { %s1651_s6 = smov 8   ;;  %s1652_s17 = smov 128  }
  0x73   : > { %837 = dma.hbm_to_vmem [thread:$0]  (!%p1302_p10), %s1342_s12, 512, %s1345_s24, %s1306_s22, %s1652_s17, %s1652_s17, %s1651_s6  }
  0x74   : > { %s1653_s14 = sand.u32 1, %s1152_s30   ;;  %s1014_s23 = scalar_lea.hbm %s1429_s5, 128 }
  0x75   : > { %s222_s3 = scalar_lea.sflag [#allocation5], %s1653_s14  ;;  %p1015_p0 = scmp.ne.s32.totalorder %s1429_s5, %s1014_s23 }
  0x76   : > { %p1016_p3 = pneg %p1435_p6  ;;  %s1019_s15 = scalar_lea.hbm %s1608_s1, 512 }
  0x77   : > { %p1020_p11 = scmp.lt.u32.totalorder %s1429_s5, %s1608_s1  ;;  %p1021_p12 = scmp.lt.u32.totalorder %s1019_s15, %s1014_s23 }
  0x78   : > { %p1017_p7 = pnand %p1016_p3, %p1015_p0  ;;  %p1023_p8 = scmp.lt.u32.totalorder %s1014_s23, %s1429_s5 }
  0x79   : > { %p1022_p10 = por %p1021_p12, %p1020_p11 }
  0x7a   : > { %p1018_p4 = pneg %p1017_p7 }
  0x7b   : > { %p1024_p2 = por %p1023_p8, %p1022_p10 }
  0x7d   : > { %p1025_p5 = pnand %p1024_p2, %p1018_p4 }
  0x7f   : > { %1028 = shalt.err (!%p1025_p5)
}
  0x80   : > { %s1029_s22 = scalar_lea.vmem %s1424_s8, 128  ;;  %s1179_s12 = smov [#allocation4]  }
  0x81   : > { %p1030_p1 = scmp.ne.s32.totalorder %s1424_s8, %s1029_s22  ;;  %s1034_s24 = sshll.u32 %s1179_s12, 4  ;;  %s1035_s24 = int_to_ptr.vmem [resolvable:$false] %s1034_s24 }
  0x82   : > { %s1036_s6 = scalar_lea.vmem %s1035_s24, 256  ;;  %p1037_p0 = scmp.lt.s32.totalorder %s1424_s8, %s1035_s24 }
  0x83   : > { %p1032_p13 = pnand %p1030_p1, %p1016_p3  ;;  %p1038_p7 = scmp.lt.s32.totalorder %s1036_s6, %s1029_s22 }
  0x85   : > { %p1033_p9 = pneg %p1032_p13  ;;  %p1039_p11 = por %p1038_p7, %p1037_p0 }
  0x87   : > { %p1040_p12 = pnand %p1039_p11, %p1033_p9 }
  0x89   : > { %1043 = shalt.err (!%p1040_p12)
}
  0x8a   : > { %831 = dma.hbm_to_vmem [thread:$0]  (!%p1435_p6), %s1429_s5, 128, %s1424_s8, %s222_s3  }
  0x8b   : > { %p1654_p4 = scmp.ne.s32.totalorder %s1636_s18, 0 }
  0x8c   : > { %s1496_s17 = sand.u32 (!%p1654_p4), 1, %s1148_s29   ;;  %p1655_p3 = scmp.ne.s32.totalorder (!%p1654_p4), %s1640_s13, 0 }
  0x8d   : > { %298 = sbr.rel (%p1654_p4) target bundleno = 823 (0x337), region = 40  ;;  %s759_s14 = sshll.u32 (!%p1654_p4), %s1496_s17, 3 }
  0x8e   : > { %s301_s23 = scalar_lea.sflag (!%p1654_p4), [#allocation5], %s1496_s17  ;;  %s1500_s21 = scalar_lea.vmem (!%p1654_p4), [#allocation4], %s759_s14 }
  0x94   : > { %1119 = dma.done.wait (%p1655_p3), %s301_s23, 128  }
  0x95   : > { %1121 = vsyncadd (%p1655_p3), %s301_s23, 4294967168  ;;  %s309_s5 = sand.u32 1, %s1354_s20   ;;  %s311_s8 = sand.u32 1, %s1136_s26  }
  0x96   : > { %s760_s18 = sshll.u32 %s311_s8, 5  ;;  %s310_s0 = scalar_lea.sflag [#allocation8], %s309_s5 }
  0x97   : > { %s313_s3 = scalar_lea.vmem [#allocation7], %s760_s18  ;;  %p1656_p6 = scmp.ne.s32.totalorder %s1642_s2, 0 }
  0x99   : > { %1123 = dma.done.wait (%p1656_p6), %s310_s0, 1024  }
  0x9a   : > { %1125 = vsyncadd (%p1656_p6), %s310_s0, 4294966272  ;;  %s1657_s19 = sld [smem:[#allocation16_spill]]  ;;  %s1658_s15 = sld [smem:[#allocation15_spill]] }
  0x9b   : > { %s1659_s12 = sld [smem:[#allocation24_spill]]  ;;  %s1660_s2 = sld [smem:[#allocation23_spill]] }
  0x9c   : > { %s1526_s8 = scalar_lea.vmem [#allocation9], %s760_s18  ;;  %s1528_s0 = scalar_lea.vmem [#allocation10], %s759_s14 }
  0xa0   : > { %s374_s16 = sld [smem:[#allocation3 + %s1657_s19]]  ;;  %p366_p10 = scmp.lt.s32.totalorder %s1657_s19, 1 }
  0xa1   : > { %s764_s13 = sshll.u32 %s1658_s15, 3 }
  0xa2   : > { %s1689_s19 = smov (!%p366_p10, %s1657_s19), 1 }
  0xa3   : > { %s763_s20 = sshll.u32 %s1689_s19, 2  ;;  %s372_s24 = scalar_lea.vmem %s1659_s12, %s1689_s19 }
  0xa4   : > { %s369_s5 = scalar_lea.vmem %s1660_s2, %s763_s20 }
  0xa6   : > { %p765_p8 = scmp.ge.s32.totalorder %s764_s13, %s374_s16 }
  0xa7   : > { %v381_v0 = vld [vmem:[%s313_s3] sm:$0xff] (!%p765_p8)  ;;  %v382_v1 = vld [vmem:[%s313_s3 + $0x8] sm:$0xff] (!%p765_p8)  ;;  %v383_v2 = vld [vmem:[%s313_s3 + $0x10] sm:$0xff] (!%p765_p8)  ;;  %v1180_v3 = vmov (!%p765_p8), 0.0|0.0   ;;  %vm1181_vm0 = vmmov (!%p765_p8), 0   ;;  %v1182_v6 = vmov (!%p765_p8), 0.0   ;;  %v385_v9 = vlaneseq (!%p765_p8) }
  0xa8   : > { %378 = sbr.rel (%p765_p8) target bundleno = 795 (0x31b), region = 56  ;;  %808 = vmatprep.subr.bf16.mxu0 (!%p765_p8), %v1180_v3  ;;  %v809_v4 = vpack.c.bf16 (!%p765_p8), %v382_v1, %v381_v0  ;;  %v384_v5 = vld [vmem:[%s313_s3 + $0x18] sm:$0xff] (!%p765_p8)  ;;  %794 = vmatprep.mubr.msk.f32.mxu0 (!%p765_p8), %vm1181_vm0, %v1182_v6  ;;  %vm389_vm1 = vcmask (!%p765_p8), 261120   ;;  %v380_v12 = vld [vmem:[%s369_s5] sm:$0x7] (!%p765_p8)  ;;  %v495_v20 = vld [vmem:[%s1526_s8] sm:$0xff] (!%p765_p8) }
  0xa9   : > { %814 = vmatprep.subr.bf16.mxu1 (!%p765_p8), %v1180_v3  ;;  %805 = vmatprep.mubr.msk.f32.mxu1 (!%p765_p8), %vm1181_vm0, %v1182_v6  ;;  %v812_v7 = vpack.c.bf16 (!%p765_p8), %v384_v5, %v383_v2  ;;  %v379_v8 = vld [vmem:[%s1500_s21] sm:$0xff] (!%p765_p8)  ;;  %v386_v10 = vshrl.u32 (!%p765_p8), %v385_v9, 7  ;;  %v496_v21 = vld [vmem:[%s1526_s8 + $0x8] sm:$0xff] (!%p765_p8) }
  0xaa   : > { %810 = vmatpush3.bf16.msra.mxu0 (!%p765_p8), %v809_v4  ;;  %v497_v22 = vld [vmem:[%s1526_s8 + $0x10] sm:$0xff] (!%p765_p8)  ;;  %v815_v23 = vpack.c.bf16 (!%p765_p8), %v496_v21, %v495_v20  ;;  %v498_v24 = vld [vmem:[%s1526_s8 + $0x18] sm:$0xff] (!%p765_p8) }
  0xab   : > { %811 = vmatprep.subr.bf16.mxu0 (!%p765_p8), %v1180_v3  ;;  %v387_v11 = vsub.s32 (!%p765_p8), 0, %v386_v10  ;;  %v818_v25 = vpack.c.bf16 (!%p765_p8), %v498_v24, %v497_v22  ;;  %v482_v34 = vsub.s32 (!%p765_p8), 1, %v386_v10  ;;  %v487_v35 = vsub.s32 (!%p765_p8), 2, %v386_v10  ;;  %v767_v48 = vld [vmem:[%s372_s24] ss:$0 sm:$0xff] (!%p765_p8) }
  0xac   : > { %816 = vmatpush3.bf16.msra.mxu1 (!%p765_p8), %v815_v23 }
  0xad   : > { %v388_v13 = vrot.slane (!%p765_p8), %v380_v12, %v387_v11  ;;  %817 = vmatprep.subr.bf16.mxu1 (!%p765_p8), %v1180_v3  ;;  %v483_v36 = vrot.slane (!%p765_p8), %v380_v12, %v482_v34  ;;  %v488_v39 = vrot.slane (!%p765_p8), %v380_v12, %v487_v35 }
  0xae   : > { %813 = vmatpush3.bf16.msra.mxu0 (!%p765_p8), %v812_v7 }
  0xb0   : > { %819 = vmatpush3.bf16.msra.mxu1 %v818_v25 }
  0xb1   : > { %795 = vmatmul.mubr.msk.f32.vlgmr.msra.gmra.mrb[0].mxu0 %vm389_vm1, %v379_v8 }
 0x184   : > { %v459_v14 = vpop.f32.mrb[0].mxu0 }
 0x185   : > { %v460_v15 = vadd.f32 %v459_v14, %v388_v13  ;;  %v796_v16 = vpop.f32.mrb[1].mxu0 }
 0x187   : > { %v463_v17 = vsel %vm389_vm1, %v460_v15, 0.0  ;;  %v468_v18 = vmul.f32 %v460_v15, %v460_v15 }
 0x188   : > { %464 = vadd.xlane.f32.xlu0 %v463_v17 }
 0x189   : > { %v469_v19 = vsel %vm389_vm1, %v468_v18, 0.0 }
 0x18c   : > { %470 = vadd.xlane.f32.xlu0 %v469_v19 }
 0x215   : > { %v465_v26 = vpop.xlane.xlu0 %464 }
 0x216   : > { %v467_v27 = vmul.f32 0.03125, %v465_v26 }
 0x218   : > { %v473_v29 = vmul.f32 %v467_v27, %v467_v27  ;;  %v476_v37 = vsub.f32 %v460_v15, %v467_v27 }
 0x219   : > { %v471_v28 = vpop.xlane.xlu0 %470 }
 0x21a   : > { %v472_v30 = vmul.f32 0.03125, %v471_v28 }
 0x21c   : > { %v474_v31 = vsub.f32 %v472_v30, %v473_v29 }
 0x21e   : > { %v475_v32 = vmax.f32 %v474_v31, 0.0 }
 0x220   : > { %v477_v33 = vadd.f32 1e-05, %v475_v32 }
 0x222   : > { %938 = vrsqrt.f32 %v477_v33 }
 0x22c   : > { %v939_v38 = vpop.eup %938 }
 0x22d   : > { %v479_v40 = vmul.f32 %v939_v38, %v476_v37 }
 0x22f   : > { %v484_v41 = vmul.f32 %v483_v36, %v479_v40 }
 0x231   : > { %v489_v42 = vadd.f32 %v488_v39, %v484_v41 }
 0x233   : > { %v491_v43 = vmul.f32 0.70710677, %v489_v42  ;;  %v490_v45 = vmul.f32 0.5, %v489_v42 }
 0x235   : > { %940 = verf.f32 %v491_v43 }
 0x23f   : > { %v941_v44 = vpop.eup %940 }
 0x240   : > { %v493_v46 = vadd.f32 1.0, %v941_v44 }
 0x242   : > { %v494_v47 = vmul.f32 %v493_v46, %v490_v45 }
 0x244   : > { %806 = vmatmul.mubr.msk.f32.vlgmr.msra.gmra.mrb[0].mxu1 %vm389_vm1, %v494_v47 }
 0x317   : > { %v575_v49 = vpop.f32.mrb[0].mxu1 }
 0x318   : > { %v576_v50 = vadd.f32 %v767_v48, %v575_v49  ;;  %v807_v51 = vpop.f32.mrb[1].mxu1 }
 0x31a   : > { %579 = vst [vmem:[%s1528_s0] sm:$0xff] %v576_v50 }
 0x31b PF: > { %s1662_s3 = sld [smem:[#allocation16_spill]]  ;;  %s1663_s15 = sld [smem:[#allocation15_spill]] }
 0x31c   : > { %s1664_s16 = sld [smem:[#allocation19_spill]]  ;;  %s596_s7 = sshll.u32 %s1528_s0, 4  ;;  %s1548_s7 = int_to_ptr.vmem [resolvable:$true] %s596_s7 }
 0x31d   : > { %s1665_s19 = sld [smem:[#allocation25_spill]]  ;;  %s581_s23 = scalar_lea.sflag [#allocation6], %s1496_s17 }
 0x31e   : > { %s1044_s2 = scalar_lea.vmem %s1548_s7, 128  ;;  %s1183_s5 = smov [#allocation10]  }
 0x31f   : > { %p1045_p2 = scmp.ne.s32.totalorder %s1548_s7, %s1044_s2  ;;  %s1048_s8 = sshll.u32 %s1183_s5, 4  ;;  %s1049_s8 = int_to_ptr.vmem [resolvable:$false] %s1048_s8 }
 0x320   : > { %s1050_s0 = scalar_lea.vmem %s1049_s8, 256  ;;  %p1051_p9 = scmp.lt.s32.totalorder %s1548_s7, %s1049_s8 }
 0x321   : > { %s770_s13 = sshll.u32 %s1662_s3, 1  ;;  %p1052_p0 = scmp.lt.s32.totalorder %s1050_s0, %s1044_s2 }
 0x322   : > { %s592_s20 = sadd.s32 %s1663_s15, %s770_s13  ;;  %p1666_p5 = scmp.ne.s32.totalorder %s1664_s16, 0 }
 0x323   : > { %s771_s22 = sshll.u32 %s592_s20, 7  ;;  %p1053_p7 = por %p1052_p0, %p1051_p9 }
 0x324   : > { %s594_s24 = scalar_lea.hbm %s1665_s19, %s771_s22  ;;  %p1046_p1 = pnand %p1045_p2, %p1666_p5 }
 0x326   : > { %p1047_p13 = pneg %p1046_p1 }
 0x328   : > { %p1054_p11 = pnand %p1053_p7, %p1047_p13 }
 0x32a   : > { %1057 = shalt.err (!%p1054_p11)
}
 0x32b   : > { %s1058_s14 = scalar_lea.hbm %s594_s24, 128  ;;  %s1062_s18 = scalar_lea.hbm %s1665_s19, 512 }
 0x32c   : > { %p1059_p12 = scmp.ne.s32.totalorder %s594_s24, %s1058_s14  ;;  %p1063_p6 = scmp.lt.u32.totalorder %s594_s24, %s1665_s19 }
 0x32d   : > { %p1064_p10 = scmp.lt.u32.totalorder %s1062_s18, %s1058_s14  ;;  %p1066_p2 = scmp.lt.u32.totalorder %s1058_s14, %s594_s24 }
 0x32e   : > { %p1060_p4 = pnand %p1059_p12, %p1666_p5 }
 0x32f   : > { %p1065_p8 = por %p1064_p10, %p1063_p6 }
 0x330   : > { %p1061_p3 = pneg %p1060_p4 }
 0x331   : > { %p1067_p1 = por %p1066_p2, %p1065_p8 }
 0x333   : > { %p1068_p13 = pnand %p1067_p1, %p1061_p3 }
 0x335   : > { %1071 = shalt.err (!%p1068_p13)
}
 0x336   : > { %826 = dma.vmem_to_hbm [thread:$0]  (%p1666_p5), %s1548_s7, 128, %s594_s24, %s581_s23  }
 0x337 PF: > { %p843_p9 = scmp.ge.s32.totalorder %s1172_s11, 2  ;;  %s608_s13 = sand.u32 1, %s1144_s28  }
 0x338   : > { %p1667_p0 = scmp.ne.s32.totalorder %s1647_s25, 0  ;;  %s609_s20 = scalar_lea.sflag [#allocation6], %s608_s13 }
 0x33a   : > { %p839_p7 = pnand %p843_p9, %p1667_p0 }
 0x33c   : > { %1127 = dma.done.wait (!%p839_p7), %s609_s20, 128  }
 0x33d   : > { %1129 = vsyncadd (!%p839_p7), %s609_s20, 4294967168  ;;  %s31_s11 = sadd.s32 1, %s1172_s11   ;;  %s1668_s22 = sld [smem:[#allocation20_spill]] }
 0x33e   : > { %p28_p11 = scmp.ge.s32.totalorder %s31_s11, 6   ;;  %s1669_s16 = sld [smem:[#allocation21_spill]] }
 0x33f   : > { %s1670_s12 = sld [smem:[#allocation17_spill]]  ;;  %s1671_s6 = sld [smem:[#allocation18_spill]] }
 0x340   : > { %s1672_s0 = smov %s1136_s26  ;;  %s1673_s26 = smov %s1140_s27 }
 0x341   : > { %s1675_s28 = smov %s1148_s29  ;;  %s1676_s29 = smov %s1152_s30 }
 0x342   : > { %s1678_s7 = smov %s1164_s9  ;;  %s1679_s8 = smov %s1168_s10 }
 0x343   : > { %s1674_s27 = smov %s1668_s22  ;;  %30 = sbr.rel (!%p28_p11) target bundleno = 28 (0x1c), region = 119 }
 0x344   : > { %s1677_s30 = smov %s1669_s16 }
 0x345   : > { %s1680_s9 = smov %s1670_s12  ;;  %s1681_s10 = smov %s1671_s6 }
 0x34a   :  { %614 = vsyncpa [#allocation5], 1 }
 0x34b   :  { %616 = vsyncpa [#allocation5 + $0x1], 1 }
 0x34c   :  { %617 = vsyncpa [#allocation8], 1 }
 0x34d   :  { %619 = vsyncpa [#allocation8 + $0x1], 1 }
 0x34e   :  { %620 = vsyncpa [#allocation6], 1 }
 0x34f   :  { %622 = vsyncpa [#allocation6 + $0x1], 1 }

</bundles_post_ra>
